<compile_context>
chip_gen: v6e
topology: v6e:2x2x1
jax: 0.10.0
libtpu: 0.0.40
codegen_flags: <defaults>
</compile_context>

<pallas_src>
import functools

import jax
import jax.numpy as jnp
from jax.experimental import pallas as pl
from jax.experimental.pallas import tpu as pltpu

# ----------------------------- config (ToyGraphSpectralResnetConfig) ------------------
N_LAYERS = 2
RANK = 3                 # filter_approximation_rank
N_EMBED = 32
MULT = 4                 # linear_size_multiplier
N_HEAD = 4
LN_EPS = 1e-5
VOCAB = 11
NLL_EPS = 1e-6
EMB_SIGMA = 0.1
MAX_DEPTH = 8
INIT_STD = 0.02

B = 2                    # batch of graphs
N = 16                   # nodes per graph

_act = jax.nn.gelu       # config.activation


# ----------------------------- kernel -------------------------------------------------
def _layernorm(x, gamma, beta, eps):
    # x: (BN, D); gamma, beta: (1, D)
    mu = jnp.mean(x, axis=-1, keepdims=True)
    var = jnp.mean(jnp.square(x - mu), axis=-1, keepdims=True)
    return (x - mu) * jax.lax.rsqrt(var + eps) * gamma + beta


def fused_forward_kernel(
        nodes_ref, depths_ref, tgt_ref,            # (BN, 1) int32
        lam_ref,                                   # (BN, 1) f32
        u_ref, iu_ref,                             # (B, N, N) f32
        node_emb_ref, depth_emb_ref,               # (V, D), (MAX_DEPTH, D)
        sg_ref, sb_ref, coeff_ref, wp_ref, bp_ref,  # spectral block weights (L, ...)
        mg_ref, mb_ref, w1_ref, b1_ref, w2_ref, b2_ref,  # MLP block weights (L, ...)
        loss_ref,                                  # (1, 1) f32 output
        *, n_layers, rank, b, n, eps, nll_eps, emb_sigma):
    f32 = jnp.float32
    bn = b * n

    # ---- ToyGraphEmbedder: embedding gathers as one-hot matmuls on the MXU ----------
    node_emb = node_emb_ref[...]                                    # (V, D)
    depth_emb = depth_emb_ref[...]                                  # (MD, D)
    nodes = nodes_ref[...]                                          # (BN, 1)
    depths = depths_ref[...]                                        # (BN, 1)
    node_oh = jnp.where(
        jax.lax.broadcasted_iota(jnp.int32, (bn, node_emb.shape[0]), 1) == nodes,
        1.0, 0.0)
    depth_oh = jnp.where(
        jax.lax.broadcasted_iota(jnp.int32, (bn, depth_emb.shape[0]), 1) == depths,
        1.0, 0.0)
    x = (jnp.dot(node_oh, node_emb, preferred_element_type=f32)
         + emb_sigma * jnp.dot(depth_oh, depth_emb, preferred_element_type=f32))  # (BN, D)

    # ---- eigenvalue Vandermonde, shared by every layer's spectral filter ------------
    lam = lam_ref[...]                                              # (BN, 1)
    r_iota = jax.lax.broadcasted_iota(jnp.int32, (bn, rank), 1)
    lam_pows = jnp.ones((bn, rank), f32)
    for r in range(1, rank):                                        # static, rank tiny
        lam_pows = jnp.where(r_iota >= r, lam_pows * lam, lam_pows)  # lam_pows[:,c]=lam^c

    # ---- n_layers x { spectral conv block ; MLP block }, statically unrolled --------
    for layer in range(n_layers):
        # --- spectral graph-conv block ---
        h = _layernorm(x, sg_ref[layer], sb_ref[layer], eps)        # (BN, D)
        filt = jnp.dot(lam_pows, coeff_ref[layer],
                       preferred_element_type=f32)                  # (BN, D)
        parts = []
        for bi in range(b):                                         # static per-batch GFT
            hb = h[bi * n:(bi + 1) * n, :]                          # (N, D)
            spec = jnp.dot(iu_ref[bi], hb, preferred_element_type=f32)
            spec = spec * filt[bi * n:(bi + 1) * n, :]
            parts.append(jnp.dot(u_ref[bi], spec, preferred_element_type=f32))
        g = jnp.concatenate(parts, axis=0)                          # (BN, D)
        x = x + jnp.dot(g, wp_ref[layer], preferred_element_type=f32) + bp_ref[layer]

        # --- MLP block ---
        h = _layernorm(x, mg_ref[layer], mb_ref[layer], eps)
        z = jnp.dot(h, w1_ref[layer], preferred_element_type=f32) + b1_ref[layer]
        z = _act(z)
        x = x + jnp.dot(z, w2_ref[layer], preferred_element_type=f32) + b2_ref[layer]

    # ---- tied-embedding NLL loss, fully reduced in-kernel ---------------------------
    logits = jax.lax.dot_general(x, node_emb, (((1,), (1,)), ((), ())),
                                 preferred_element_type=f32)        # (BN, V)
    m = jnp.max(logits, axis=-1, keepdims=True)
    lse = jnp.log(jnp.sum(jnp.exp(logits - m), axis=-1, keepdims=True))
    tgt = tgt_ref[...]                                              # (BN, 1)
    onehot = jax.lax.broadcasted_iota(jnp.int32, logits.shape, 1) == tgt
    logit_tgt = jnp.sum(jnp.where(onehot, logits, 0.0), axis=-1, keepdims=True)
    p_tgt = jnp.exp(logit_tgt - m - lse)                            # exact softmax prob
    nll = -jnp.log(p_tgt + nll_eps)                                 # (BN, 1)
    loss_ref[...] = jnp.sum(nll, axis=0, keepdims=True) * (1.0 / bn)


# ----------------------------- pallas_call wrapper -------------------------------------
def forward(params, input_nodes, input_depths, output_nodes,
            eigenvalues, eigenvectors, inv_eigenvectors):
    bb, nn = input_nodes.shape
    bn = bb * nn

    nodes = input_nodes.reshape(bn, 1).astype(jnp.int32)
    depths = input_depths.reshape(bn, 1).astype(jnp.int32)
    targets = output_nodes.reshape(bn, 1).astype(jnp.int32)
    lam = eigenvalues.reshape(bn, 1).astype(jnp.float32)
    u = eigenvectors.astype(jnp.float32)
    iu = inv_eigenvectors.astype(jnp.float32)

    kernel = functools.partial(
        fused_forward_kernel, n_layers=N_LAYERS, rank=RANK, b=bb, n=nn,
        eps=LN_EPS, nll_eps=NLL_EPS, emb_sigma=EMB_SIGMA)

    args = (nodes, depths, targets, lam, u, iu,
            params["node_embed"], params["depth_embed"],
            params["spec_gamma"], params["spec_beta"], params["spec_coeff"],
            params["spec_wp"], params["spec_bp"],
            params["mlp_gamma"], params["mlp_beta"],
            params["mlp_w1"], params["mlp_b1"],
            params["mlp_w2"], params["mlp_b2"])

    loss = pl.pallas_call(
        kernel,
        out_shape=jax.ShapeDtypeStruct((1, 1), jnp.float32),
        in_specs=[pl.BlockSpec(memory_space=pltpu.MemorySpace.VMEM)
                  for _ in range(len(args))],
        out_specs=pl.BlockSpec(memory_space=pltpu.MemorySpace.VMEM),
    )(*args)
    return loss[0, 0]


# ----------------------------- parameters (stacked per-layer weights) ------------------
def init_params(key):
    f32 = jnp.float32
    hidden = N_EMBED * MULT
    keys = jax.random.split(key, 2 + 4 * N_LAYERS)
    node_embed = INIT_STD * jax.random.normal(keys[0], (VOCAB, N_EMBED), f32)
    depth_embed = INIT_STD * jax.random.normal(keys[1], (MAX_DEPTH, N_EMBED), f32)

    spec_coeff, spec_wp, mlp_w1, mlp_w2 = [], [], [], []
    for layer in range(N_LAYERS):
        k0, k1, k2, k3 = keys[2 + 4 * layer: 2 + 4 * layer + 4]
        head_coeff = INIT_STD * jax.random.normal(k0, (N_HEAD, RANK), f32)
        # expand per-head filter coefficients to per-channel: (RANK, D)
        spec_coeff.append(jnp.repeat(head_coeff, N_EMBED // N_HEAD, axis=0).T)
        spec_wp.append(INIT_STD * jax.random.normal(k1, (N_EMBED, N_EMBED), f32))
        mlp_w1.append(INIT_STD * jax.random.normal(k2, (N_EMBED, hidden), f32))
        mlp_w2.append(INIT_STD * jax.random.normal(k3, (hidden, N_EMBED), f32))

    L = N_LAYERS
    return {
        "node_embed": node_embed,
        "depth_embed": depth_embed,
        "spec_gamma": jnp.ones((L, 1, N_EMBED), f32),
        "spec_beta": jnp.zeros((L, 1, N_EMBED), f32),
        "spec_coeff": jnp.stack(spec_coeff),           # (L, RANK, D)
        "spec_wp": jnp.stack(spec_wp),                 # (L, D, D)
        "spec_bp": jnp.zeros((L, 1, N_EMBED), f32),
        "mlp_gamma": jnp.ones((L, 1, N_EMBED), f32),
        "mlp_beta": jnp.zeros((L, 1, N_EMBED), f32),
        "mlp_w1": jnp.stack(mlp_w1),                   # (L, D, H)
        "mlp_b1": jnp.zeros((L, 1, hidden), f32),
        "mlp_w2": jnp.stack(mlp_w2),                   # (L, H, D)
        "mlp_b2": jnp.zeros((L, 1, N_EMBED), f32),
    }


# ----------------------------- main -----------------------------------------------------
if __name__ == "__main__":
    key = jax.random.PRNGKey(0)
    kp, kn, kd, ko, ka = jax.random.split(key, 5)
    params = init_params(kp)

    input_nodes = jax.random.randint(kn, (B, N), 0, VOCAB)
    input_depths = jax.random.randint(kd, (B, N), 0, MAX_DEPTH)
    output_nodes = jax.random.randint(ko, (B, N), 0, VOCAB)

    # per-graph symmetric Laplacian -> eigendecomposition (inverse == transpose)
    a = jax.random.uniform(ka, (B, N, N), jnp.float32)
    adj = 0.5 * (a + jnp.transpose(a, (0, 2, 1)))
    adj = adj * (1.0 - jnp.eye(N, dtype=jnp.float32)[None])
    deg = jnp.sum(adj, axis=-1)
    lap = jax.vmap(jnp.diag)(deg) - adj
    eigenvalues, eigenvectors = jnp.linalg.eigh(lap)
    inv_eigenvectors = jnp.transpose(eigenvectors, (0, 2, 1))

    loss = jax.jit(forward)(params, input_nodes, input_depths, output_nodes,
                            eigenvalues.astype(jnp.float32),
                            eigenvectors.astype(jnp.float32),
                            inv_eigenvectors.astype(jnp.float32))
    jax.block_until_ready(loss)
    print("KERNEL_OK")
</pallas_src>

<mosaic_0001>
module attributes {stable_mosaic.version = 11 : i64} {
  func.func @fused_forward_kernel(%arg0: memref<32x1xi32, #tpu.memory_space<vmem>>, %arg1: memref<32x1xi32, #tpu.memory_space<vmem>>, %arg2: memref<32x1xi32, #tpu.memory_space<vmem>>, %arg3: memref<32x1xf32, #tpu.memory_space<vmem>>, %arg4: memref<2x16x16xf32, #tpu.memory_space<vmem>>, %arg5: memref<2x16x16xf32, #tpu.memory_space<vmem>>, %arg6: memref<11x32xf32, #tpu.memory_space<vmem>>, %arg7: memref<8x32xf32, #tpu.memory_space<vmem>>, %arg8: memref<2x1x32xf32, #tpu.memory_space<vmem>>, %arg9: memref<2x1x32xf32, #tpu.memory_space<vmem>>, %arg10: memref<2x3x32xf32, #tpu.memory_space<vmem>>, %arg11: memref<2x32x32xf32, #tpu.memory_space<vmem>>, %arg12: memref<2x1x32xf32, #tpu.memory_space<vmem>>, %arg13: memref<2x1x32xf32, #tpu.memory_space<vmem>>, %arg14: memref<2x1x32xf32, #tpu.memory_space<vmem>>, %arg15: memref<2x32x128xf32, #tpu.memory_space<vmem>>, %arg16: memref<2x1x128xf32, #tpu.memory_space<vmem>>, %arg17: memref<2x128x32xf32, #tpu.memory_space<vmem>>, %arg18: memref<2x1x32xf32, #tpu.memory_space<vmem>>, %arg19: memref<1x1xf32, #tpu.memory_space<vmem>>) attributes {dimension_semantics = [], scalar_prefetch = 0 : i64, scratch_operands = 0 : i64, tpu.core_type = #tpu.core_type<tc>} {
    %c0 = arith.constant 0 : index
    %c0_0 = arith.constant 0 : index
    %0 = vector.load %arg6[%c0, %c0_0] : memref<11x32xf32, #tpu.memory_space<vmem>>, vector<11x32xf32>
    %c0_1 = arith.constant 0 : index
    %c0_2 = arith.constant 0 : index
    %1 = vector.load %arg7[%c0_1, %c0_2] : memref<8x32xf32, #tpu.memory_space<vmem>>, vector<8x32xf32>
    %c0_3 = arith.constant 0 : index
    %c0_4 = arith.constant 0 : index
    %2 = vector.load %arg0[%c0_3, %c0_4] : memref<32x1xi32, #tpu.memory_space<vmem>>, vector<32x1xi32>
    %c0_5 = arith.constant 0 : index
    %c0_6 = arith.constant 0 : index
    %3 = vector.load %arg1[%c0_5, %c0_6] : memref<32x1xi32, #tpu.memory_space<vmem>>, vector<32x1xi32>
    %4 = tpu.iota {dimensions = array<i32: 1>} : vector<32x11xi32>
    %5 = vector.broadcast %2 : vector<32x1xi32> to vector<32x11xi32>
    %6 = arith.cmpi eq, %4, %5 : vector<32x11xi32>
    %cst = arith.constant 1.000000e+00 : f32
    %cst_7 = arith.constant 0.000000e+00 : f32
    %7 = vector.broadcast %cst : f32 to vector<32x11xf32>
    %8 = vector.broadcast %cst_7 : f32 to vector<32x11xf32>
    %9 = arith.select %6, %7, %8 : vector<32x11xi1>, vector<32x11xf32>
    %10 = tpu.iota {dimensions = array<i32: 1>} : vector<32x8xi32>
    %11 = vector.broadcast %3 : vector<32x1xi32> to vector<32x8xi32>
    %12 = arith.cmpi eq, %10, %11 : vector<32x8xi32>
    %cst_8 = arith.constant 1.000000e+00 : f32
    %cst_9 = arith.constant 0.000000e+00 : f32
    %13 = vector.broadcast %cst_8 : f32 to vector<32x8xf32>
    %14 = vector.broadcast %cst_9 : f32 to vector<32x8xf32>
    %15 = arith.select %12, %13, %14 : vector<32x8xi1>, vector<32x8xf32>
    %cst_10 = arith.constant dense<0.000000e+00> : vector<32x32xf32>
    %16 = tpu.matmul %9, %0, %cst_10 {dimension_numbers = #tpu.dot_dimension_numbers<[1], [0], [0], [1], [0, 0, 1, 1], [], []>} : vector<32x11xf32>, vector<11x32xf32>, vector<32x32xf32> -> vector<32x32xf32>
    %cst_11 = arith.constant dense<0.000000e+00> : vector<32x32xf32>
    %17 = tpu.matmul %15, %1, %cst_11 {dimension_numbers = #tpu.dot_dimension_numbers<[1], [0], [0], [1], [0, 0, 1, 1], [], []>} : vector<32x8xf32>, vector<8x32xf32>, vector<32x32xf32> -> vector<32x32xf32>
    %cst_12 = arith.constant 1.000000e-01 : f32
    %18 = vector.broadcast %cst_12 : f32 to vector<32x32xf32>
    %19 = arith.mulf %18, %17 : vector<32x32xf32>
    %20 = arith.addf %16, %19 : vector<32x32xf32>
    %c0_13 = arith.constant 0 : index
    %c0_14 = arith.constant 0 : index
    %21 = vector.load %arg3[%c0_13, %c0_14] : memref<32x1xf32, #tpu.memory_space<vmem>>, vector<32x1xf32>
    %22 = tpu.iota {dimensions = array<i32: 1>} : vector<32x3xi32>
    %cst_15 = arith.constant 1.000000e+00 : f32
    %23 = vector.broadcast %cst_15 : f32 to vector<32x3xf32>
    %c1_i32 = arith.constant 1 : i32
    %24 = vector.broadcast %c1_i32 : i32 to vector<32x3xi32>
    %25 = arith.cmpi sge, %22, %24 : vector<32x3xi32>
    %26 = vector.broadcast %21 : vector<32x1xf32> to vector<32x3xf32>
    %27 = arith.mulf %23, %26 : vector<32x3xf32>
    %28 = arith.select %25, %27, %23 : vector<32x3xi1>, vector<32x3xf32>
    %c2_i32 = arith.constant 2 : i32
    %29 = vector.broadcast %c2_i32 : i32 to vector<32x3xi32>
    %30 = arith.cmpi sge, %22, %29 : vector<32x3xi32>
    %31 = vector.broadcast %21 : vector<32x1xf32> to vector<32x3xf32>
    %32 = arith.mulf %28, %31 : vector<32x3xf32>
    %33 = arith.select %30, %32, %28 : vector<32x3xi1>, vector<32x3xf32>
    %c0_16 = arith.constant 0 : index
    %c0_17 = arith.constant 0 : index
    %c0_18 = arith.constant 0 : index
    %34 = vector.load %arg8[%c0_16, %c0_17, %c0_18] : memref<2x1x32xf32, #tpu.memory_space<vmem>>, vector<1x1x32xf32>
    %35 = vector.shape_cast %34 : vector<1x1x32xf32> to vector<1x32xf32>
    %c0_19 = arith.constant 0 : index
    %c0_20 = arith.constant 0 : index
    %c0_21 = arith.constant 0 : index
    %36 = vector.load %arg9[%c0_19, %c0_20, %c0_21] : memref<2x1x32xf32, #tpu.memory_space<vmem>>, vector<1x1x32xf32>
    %37 = vector.shape_cast %36 : vector<1x1x32xf32> to vector<1x32xf32>
    %cst_22 = arith.constant dense<0.000000e+00> : vector<32xf32>
    %38 = vector.multi_reduction <add>, %20, %cst_22 [1] : vector<32x32xf32> to vector<32xf32>
    %39 = vector.shape_cast %38 : vector<32xf32> to vector<32x1xf32>
    %cst_23 = arith.constant 3.200000e+01 : f32
    %40 = vector.broadcast %cst_23 : f32 to vector<32x1xf32>
    %41 = arith.divf %39, %40 : vector<32x1xf32>
    %42 = vector.broadcast %41 : vector<32x1xf32> to vector<32x32xf32>
    %43 = arith.subf %20, %42 : vector<32x32xf32>
    %44 = arith.mulf %43, %43 : vector<32x32xf32>
    %cst_24 = arith.constant dense<0.000000e+00> : vector<32xf32>
    %45 = vector.multi_reduction <add>, %44, %cst_24 [1] : vector<32x32xf32> to vector<32xf32>
    %46 = vector.shape_cast %45 : vector<32xf32> to vector<32x1xf32>
    %cst_25 = arith.constant 3.200000e+01 : f32
    %47 = vector.broadcast %cst_25 : f32 to vector<32x1xf32>
    %48 = arith.divf %46, %47 : vector<32x1xf32>
    %49 = vector.broadcast %41 : vector<32x1xf32> to vector<32x32xf32>
    %50 = arith.subf %20, %49 : vector<32x32xf32>
    %cst_26 = arith.constant 9.99999974E-6 : f32
    %51 = vector.broadcast %cst_26 : f32 to vector<32x1xf32>
    %52 = arith.addf %48, %51 : vector<32x1xf32>
    %53 = math.rsqrt %52 : vector<32x1xf32>
    %54 = vector.broadcast %53 : vector<32x1xf32> to vector<32x32xf32>
    %55 = arith.mulf %50, %54 : vector<32x32xf32>
    %56 = vector.broadcast %35 : vector<1x32xf32> to vector<32x32xf32>
    %57 = arith.mulf %55, %56 : vector<32x32xf32>
    %58 = vector.broadcast %37 : vector<1x32xf32> to vector<32x32xf32>
    %59 = arith.addf %57, %58 : vector<32x32xf32>
    %c0_27 = arith.constant 0 : index
    %c0_28 = arith.constant 0 : index
    %c0_29 = arith.constant 0 : index
    %60 = vector.load %arg10[%c0_27, %c0_28, %c0_29] : memref<2x3x32xf32, #tpu.memory_space<vmem>>, vector<1x3x32xf32>
    %61 = vector.shape_cast %60 : vector<1x3x32xf32> to vector<3x32xf32>
    %cst_30 = arith.constant dense<0.000000e+00> : vector<32x32xf32>
    %62 = tpu.matmul %33, %61, %cst_30 {dimension_numbers = #tpu.dot_dimension_numbers<[1], [0], [0], [1], [0, 0, 1, 1], [], []>} : vector<32x3xf32>, vector<3x32xf32>, vector<32x32xf32> -> vector<32x32xf32>
    %63 = vector.extract_strided_slice %59 {offsets = [0, 0], sizes = [16, 32], strides = [1, 1]} : vector<32x32xf32> to vector<16x32xf32>
    %c0_31 = arith.constant 0 : index
    %c0_32 = arith.constant 0 : index
    %c0_33 = arith.constant 0 : index
    %64 = vector.load %arg5[%c0_31, %c0_32, %c0_33] : memref<2x16x16xf32, #tpu.memory_space<vmem>>, vector<1x16x16xf32>
    %65 = vector.shape_cast %64 : vector<1x16x16xf32> to vector<16x16xf32>
    %cst_34 = arith.constant dense<0.000000e+00> : vector<16x32xf32>
    %66 = tpu.matmul %65, %63, %cst_34 {dimension_numbers = #tpu.dot_dimension_numbers<[1], [0], [0], [1], [0, 0, 1, 1], [], []>} : vector<16x16xf32>, vector<16x32xf32>, vector<16x32xf32> -> vector<16x32xf32>
    %67 = vector.extract_strided_slice %62 {offsets = [0, 0], sizes = [16, 32], strides = [1, 1]} : vector<32x32xf32> to vector<16x32xf32>
    %68 = arith.mulf %66, %67 : vector<16x32xf32>
    %c0_35 = arith.constant 0 : index
    %c0_36 = arith.constant 0 : index
    %c0_37 = arith.constant 0 : index
    %69 = vector.load %arg4[%c0_35, %c0_36, %c0_37] : memref<2x16x16xf32, #tpu.memory_space<vmem>>, vector<1x16x16xf32>
    %70 = vector.shape_cast %69 : vector<1x16x16xf32> to vector<16x16xf32>
    %cst_38 = arith.constant dense<0.000000e+00> : vector<16x32xf32>
    %71 = tpu.matmul %70, %68, %cst_38 {dimension_numbers = #tpu.dot_dimension_numbers<[1], [0], [0], [1], [0, 0, 1, 1], [], []>} : vector<16x16xf32>, vector<16x32xf32>, vector<16x32xf32> -> vector<16x32xf32>
    %72 = vector.extract_strided_slice %59 {offsets = [16, 0], sizes = [16, 32], strides = [1, 1]} : vector<32x32xf32> to vector<16x32xf32>
    %c1 = arith.constant 1 : index
    %c0_39 = arith.constant 0 : index
    %c0_40 = arith.constant 0 : index
    %73 = vector.load %arg5[%c1, %c0_39, %c0_40] : memref<2x16x16xf32, #tpu.memory_space<vmem>>, vector<1x16x16xf32>
    %74 = vector.shape_cast %73 : vector<1x16x16xf32> to vector<16x16xf32>
    %cst_41 = arith.constant dense<0.000000e+00> : vector<16x32xf32>
    %75 = tpu.matmul %74, %72, %cst_41 {dimension_numbers = #tpu.dot_dimension_numbers<[1], [0], [0], [1], [0, 0, 1, 1], [], []>} : vector<16x16xf32>, vector<16x32xf32>, vector<16x32xf32> -> vector<16x32xf32>
    %76 = vector.extract_strided_slice %62 {offsets = [16, 0], sizes = [16, 32], strides = [1, 1]} : vector<32x32xf32> to vector<16x32xf32>
    %77 = arith.mulf %75, %76 : vector<16x32xf32>
    %c1_42 = arith.constant 1 : index
    %c0_43 = arith.constant 0 : index
    %c0_44 = arith.constant 0 : index
    %78 = vector.load %arg4[%c1_42, %c0_43, %c0_44] : memref<2x16x16xf32, #tpu.memory_space<vmem>>, vector<1x16x16xf32>
    %79 = vector.shape_cast %78 : vector<1x16x16xf32> to vector<16x16xf32>
    %cst_45 = arith.constant dense<0.000000e+00> : vector<16x32xf32>
    %80 = tpu.matmul %79, %77, %cst_45 {dimension_numbers = #tpu.dot_dimension_numbers<[1], [0], [0], [1], [0, 0, 1, 1], [], []>} : vector<16x16xf32>, vector<16x32xf32>, vector<16x32xf32> -> vector<16x32xf32>
    %81 = tpu.concatenate %71, %80 in 0 : vector<16x32xf32>, vector<16x32xf32> -> vector<32x32xf32>
    %c0_46 = arith.constant 0 : index
    %c0_47 = arith.constant 0 : index
    %c0_48 = arith.constant 0 : index
    %82 = vector.load %arg11[%c0_46, %c0_47, %c0_48] : memref<2x32x32xf32, #tpu.memory_space<vmem>>, vector<1x32x32xf32>
    %83 = vector.shape_cast %82 : vector<1x32x32xf32> to vector<32x32xf32>
    %cst_49 = arith.constant dense<0.000000e+00> : vector<32x32xf32>
    %84 = tpu.matmul %81, %83, %cst_49 {dimension_numbers = #tpu.dot_dimension_numbers<[1], [0], [0], [1], [0, 0, 1, 1], [], []>} : vector<32x32xf32>, vector<32x32xf32>, vector<32x32xf32> -> vector<32x32xf32>
    %85 = arith.addf %20, %84 : vector<32x32xf32>
    %c0_50 = arith.constant 0 : index
    %c0_51 = arith.constant 0 : index
    %c0_52 = arith.constant 0 : index
    %86 = vector.load %arg12[%c0_50, %c0_51, %c0_52] : memref<2x1x32xf32, #tpu.memory_space<vmem>>, vector<1x1x32xf32>
    %87 = vector.shape_cast %86 : vector<1x1x32xf32> to vector<1x32xf32>
    %88 = vector.broadcast %87 : vector<1x32xf32> to vector<32x32xf32>
    %89 = arith.addf %85, %88 : vector<32x32xf32>
    %c0_53 = arith.constant 0 : index
    %c0_54 = arith.constant 0 : index
    %c0_55 = arith.constant 0 : index
    %90 = vector.load %arg13[%c0_53, %c0_54, %c0_55] : memref<2x1x32xf32, #tpu.memory_space<vmem>>, vector<1x1x32xf32>
    %91 = vector.shape_cast %90 : vector<1x1x32xf32> to vector<1x32xf32>
    %c0_56 = arith.constant 0 : index
    %c0_57 = arith.constant 0 : index
    %c0_58 = arith.constant 0 : index
    %92 = vector.load %arg14[%c0_56, %c0_57, %c0_58] : memref<2x1x32xf32, #tpu.memory_space<vmem>>, vector<1x1x32xf32>
    %93 = vector.shape_cast %92 : vector<1x1x32xf32> to vector<1x32xf32>
    %cst_59 = arith.constant dense<0.000000e+00> : vector<32xf32>
    %94 = vector.multi_reduction <add>, %89, %cst_59 [1] : vector<32x32xf32> to vector<32xf32>
    %95 = vector.shape_cast %94 : vector<32xf32> to vector<32x1xf32>
    %cst_60 = arith.constant 3.200000e+01 : f32
    %96 = vector.broadcast %cst_60 : f32 to vector<32x1xf32>
    %97 = arith.divf %95, %96 : vector<32x1xf32>
    %98 = vector.broadcast %97 : vector<32x1xf32> to vector<32x32xf32>
    %99 = arith.subf %89, %98 : vector<32x32xf32>
    %100 = arith.mulf %99, %99 : vector<32x32xf32>
    %cst_61 = arith.constant dense<0.000000e+00> : vector<32xf32>
    %101 = vector.multi_reduction <add>, %100, %cst_61 [1] : vector<32x32xf32> to vector<32xf32>
    %102 = vector.shape_cast %101 : vector<32xf32> to vector<32x1xf32>
    %cst_62 = arith.constant 3.200000e+01 : f32
    %103 = vector.broadcast %cst_62 : f32 to vector<32x1xf32>
    %104 = arith.divf %102, %103 : vector<32x1xf32>
    %105 = vector.broadcast %97 : vector<32x1xf32> to vector<32x32xf32>
    %106 = arith.subf %89, %105 : vector<32x32xf32>
    %cst_63 = arith.constant 9.99999974E-6 : f32
    %107 = vector.broadcast %cst_63 : f32 to vector<32x1xf32>
    %108 = arith.addf %104, %107 : vector<32x1xf32>
    %109 = math.rsqrt %108 : vector<32x1xf32>
    %110 = vector.broadcast %109 : vector<32x1xf32> to vector<32x32xf32>
    %111 = arith.mulf %106, %110 : vector<32x32xf32>
    %112 = vector.broadcast %91 : vector<1x32xf32> to vector<32x32xf32>
    %113 = arith.mulf %111, %112 : vector<32x32xf32>
    %114 = vector.broadcast %93 : vector<1x32xf32> to vector<32x32xf32>
    %115 = arith.addf %113, %114 : vector<32x32xf32>
    %c0_64 = arith.constant 0 : index
    %c0_65 = arith.constant 0 : index
    %c0_66 = arith.constant 0 : index
    %116 = vector.load %arg15[%c0_64, %c0_65, %c0_66] : memref<2x32x128xf32, #tpu.memory_space<vmem>>, vector<1x32x128xf32>
    %117 = vector.shape_cast %116 : vector<1x32x128xf32> to vector<32x128xf32>
    %cst_67 = arith.constant dense<0.000000e+00> : vector<32x128xf32>
    %118 = tpu.matmul %115, %117, %cst_67 {dimension_numbers = #tpu.dot_dimension_numbers<[1], [0], [0], [1], [0, 0, 1, 1], [], []>} : vector<32x32xf32>, vector<32x128xf32>, vector<32x128xf32> -> vector<32x128xf32>
    %c0_68 = arith.constant 0 : index
    %c0_69 = arith.constant 0 : index
    %c0_70 = arith.constant 0 : index
    %119 = vector.load %arg16[%c0_68, %c0_69, %c0_70] : memref<2x1x128xf32, #tpu.memory_space<vmem>>, vector<1x1x128xf32>
    %120 = vector.shape_cast %119 : vector<1x1x128xf32> to vector<1x128xf32>
    %121 = vector.broadcast %120 : vector<1x128xf32> to vector<32x128xf32>
    %122 = arith.addf %118, %121 : vector<32x128xf32>
    %123 = arith.mulf %122, %122 : vector<32x128xf32>
    %124 = arith.mulf %122, %123 : vector<32x128xf32>
    %cst_71 = arith.constant 4.471500e-02 : f32
    %125 = vector.broadcast %cst_71 : f32 to vector<32x128xf32>
    %126 = arith.mulf %125, %124 : vector<32x128xf32>
    %127 = arith.addf %122, %126 : vector<32x128xf32>
    %cst_72 = arith.constant 0.797884583 : f32
    %128 = vector.broadcast %cst_72 : f32 to vector<32x128xf32>
    %129 = arith.mulf %128, %127 : vector<32x128xf32>
    %130 = math.tanh %129 : vector<32x128xf32>
    %cst_73 = arith.constant 1.000000e+00 : f32
    %131 = vector.broadcast %cst_73 : f32 to vector<32x128xf32>
    %132 = arith.addf %131, %130 : vector<32x128xf32>
    %cst_74 = arith.constant 5.000000e-01 : f32
    %133 = vector.broadcast %cst_74 : f32 to vector<32x128xf32>
    %134 = arith.mulf %133, %132 : vector<32x128xf32>
    %135 = arith.mulf %122, %134 : vector<32x128xf32>
    %c0_75 = arith.constant 0 : index
    %c0_76 = arith.constant 0 : index
    %c0_77 = arith.constant 0 : index
    %136 = vector.load %arg17[%c0_75, %c0_76, %c0_77] : memref<2x128x32xf32, #tpu.memory_space<vmem>>, vector<1x128x32xf32>
    %137 = vector.shape_cast %136 : vector<1x128x32xf32> to vector<128x32xf32>
    %cst_78 = arith.constant dense<0.000000e+00> : vector<32x32xf32>
    %138 = tpu.matmul %135, %137, %cst_78 {dimension_numbers = #tpu.dot_dimension_numbers<[1], [0], [0], [1], [0, 0, 1, 1], [], []>} : vector<32x128xf32>, vector<128x32xf32>, vector<32x32xf32> -> vector<32x32xf32>
    %139 = arith.addf %89, %138 : vector<32x32xf32>
    %c0_79 = arith.constant 0 : index
    %c0_80 = arith.constant 0 : index
    %c0_81 = arith.constant 0 : index
    %140 = vector.load %arg18[%c0_79, %c0_80, %c0_81] : memref<2x1x32xf32, #tpu.memory_space<vmem>>, vector<1x1x32xf32>
    %141 = vector.shape_cast %140 : vector<1x1x32xf32> to vector<1x32xf32>
    %142 = vector.broadcast %141 : vector<1x32xf32> to vector<32x32xf32>
    %143 = arith.addf %139, %142 : vector<32x32xf32>
    %c1_82 = arith.constant 1 : index
    %c0_83 = arith.constant 0 : index
    %c0_84 = arith.constant 0 : index
    %144 = vector.load %arg8[%c1_82, %c0_83, %c0_84] : memref<2x1x32xf32, #tpu.memory_space<vmem>>, vector<1x1x32xf32>
    %145 = vector.shape_cast %144 : vector<1x1x32xf32> to vector<1x32xf32>
    %c1_85 = arith.constant 1 : index
    %c0_86 = arith.constant 0 : index
    %c0_87 = arith.constant 0 : index
    %146 = vector.load %arg9[%c1_85, %c0_86, %c0_87] : memref<2x1x32xf32, #tpu.memory_space<vmem>>, vector<1x1x32xf32>
    %147 = vector.shape_cast %146 : vector<1x1x32xf32> to vector<1x32xf32>
    %cst_88 = arith.constant dense<0.000000e+00> : vector<32xf32>
    %148 = vector.multi_reduction <add>, %143, %cst_88 [1] : vector<32x32xf32> to vector<32xf32>
    %149 = vector.shape_cast %148 : vector<32xf32> to vector<32x1xf32>
    %cst_89 = arith.constant 3.200000e+01 : f32
    %150 = vector.broadcast %cst_89 : f32 to vector<32x1xf32>
    %151 = arith.divf %149, %150 : vector<32x1xf32>
    %152 = vector.broadcast %151 : vector<32x1xf32> to vector<32x32xf32>
    %153 = arith.subf %143, %152 : vector<32x32xf32>
    %154 = arith.mulf %153, %153 : vector<32x32xf32>
    %cst_90 = arith.constant dense<0.000000e+00> : vector<32xf32>
    %155 = vector.multi_reduction <add>, %154, %cst_90 [1] : vector<32x32xf32> to vector<32xf32>
    %156 = vector.shape_cast %155 : vector<32xf32> to vector<32x1xf32>
    %cst_91 = arith.constant 3.200000e+01 : f32
    %157 = vector.broadcast %cst_91 : f32 to vector<32x1xf32>
    %158 = arith.divf %156, %157 : vector<32x1xf32>
    %159 = vector.broadcast %151 : vector<32x1xf32> to vector<32x32xf32>
    %160 = arith.subf %143, %159 : vector<32x32xf32>
    %cst_92 = arith.constant 9.99999974E-6 : f32
    %161 = vector.broadcast %cst_92 : f32 to vector<32x1xf32>
    %162 = arith.addf %158, %161 : vector<32x1xf32>
    %163 = math.rsqrt %162 : vector<32x1xf32>
    %164 = vector.broadcast %163 : vector<32x1xf32> to vector<32x32xf32>
    %165 = arith.mulf %160, %164 : vector<32x32xf32>
    %166 = vector.broadcast %145 : vector<1x32xf32> to vector<32x32xf32>
    %167 = arith.mulf %165, %166 : vector<32x32xf32>
    %168 = vector.broadcast %147 : vector<1x32xf32> to vector<32x32xf32>
    %169 = arith.addf %167, %168 : vector<32x32xf32>
    %c1_93 = arith.constant 1 : index
    %c0_94 = arith.constant 0 : index
    %c0_95 = arith.constant 0 : index
    %170 = vector.load %arg10[%c1_93, %c0_94, %c0_95] : memref<2x3x32xf32, #tpu.memory_space<vmem>>, vector<1x3x32xf32>
    %171 = vector.shape_cast %170 : vector<1x3x32xf32> to vector<3x32xf32>
    %cst_96 = arith.constant dense<0.000000e+00> : vector<32x32xf32>
    %172 = tpu.matmul %33, %171, %cst_96 {dimension_numbers = #tpu.dot_dimension_numbers<[1], [0], [0], [1], [0, 0, 1, 1], [], []>} : vector<32x3xf32>, vector<3x32xf32>, vector<32x32xf32> -> vector<32x32xf32>
    %173 = vector.extract_strided_slice %169 {offsets = [0, 0], sizes = [16, 32], strides = [1, 1]} : vector<32x32xf32> to vector<16x32xf32>
    %c0_97 = arith.constant 0 : index
    %c0_98 = arith.constant 0 : index
    %c0_99 = arith.constant 0 : index
    %174 = vector.load %arg5[%c0_97, %c0_98, %c0_99] : memref<2x16x16xf32, #tpu.memory_space<vmem>>, vector<1x16x16xf32>
    %175 = vector.shape_cast %174 : vector<1x16x16xf32> to vector<16x16xf32>
    %cst_100 = arith.constant dense<0.000000e+00> : vector<16x32xf32>
    %176 = tpu.matmul %175, %173, %cst_100 {dimension_numbers = #tpu.dot_dimension_numbers<[1], [0], [0], [1], [0, 0, 1, 1], [], []>} : vector<16x16xf32>, vector<16x32xf32>, vector<16x32xf32> -> vector<16x32xf32>
    %177 = vector.extract_strided_slice %172 {offsets = [0, 0], sizes = [16, 32], strides = [1, 1]} : vector<32x32xf32> to vector<16x32xf32>
    %178 = arith.mulf %176, %177 : vector<16x32xf32>
    %c0_101 = arith.constant 0 : index
    %c0_102 = arith.constant 0 : index
    %c0_103 = arith.constant 0 : index
    %179 = vector.load %arg4[%c0_101, %c0_102, %c0_103] : memref<2x16x16xf32, #tpu.memory_space<vmem>>, vector<1x16x16xf32>
    %180 = vector.shape_cast %179 : vector<1x16x16xf32> to vector<16x16xf32>
    %cst_104 = arith.constant dense<0.000000e+00> : vector<16x32xf32>
    %181 = tpu.matmul %180, %178, %cst_104 {dimension_numbers = #tpu.dot_dimension_numbers<[1], [0], [0], [1], [0, 0, 1, 1], [], []>} : vector<16x16xf32>, vector<16x32xf32>, vector<16x32xf32> -> vector<16x32xf32>
    %182 = vector.extract_strided_slice %169 {offsets = [16, 0], sizes = [16, 32], strides = [1, 1]} : vector<32x32xf32> to vector<16x32xf32>
    %c1_105 = arith.constant 1 : index
    %c0_106 = arith.constant 0 : index
    %c0_107 = arith.constant 0 : index
    %183 = vector.load %arg5[%c1_105, %c0_106, %c0_107] : memref<2x16x16xf32, #tpu.memory_space<vmem>>, vector<1x16x16xf32>
    %184 = vector.shape_cast %183 : vector<1x16x16xf32> to vector<16x16xf32>
    %cst_108 = arith.constant dense<0.000000e+00> : vector<16x32xf32>
    %185 = tpu.matmul %184, %182, %cst_108 {dimension_numbers = #tpu.dot_dimension_numbers<[1], [0], [0], [1], [0, 0, 1, 1], [], []>} : vector<16x16xf32>, vector<16x32xf32>, vector<16x32xf32> -> vector<16x32xf32>
    %186 = vector.extract_strided_slice %172 {offsets = [16, 0], sizes = [16, 32], strides = [1, 1]} : vector<32x32xf32> to vector<16x32xf32>
    %187 = arith.mulf %185, %186 : vector<16x32xf32>
    %c1_109 = arith.constant 1 : index
    %c0_110 = arith.constant 0 : index
    %c0_111 = arith.constant 0 : index
    %188 = vector.load %arg4[%c1_109, %c0_110, %c0_111] : memref<2x16x16xf32, #tpu.memory_space<vmem>>, vector<1x16x16xf32>
    %189 = vector.shape_cast %188 : vector<1x16x16xf32> to vector<16x16xf32>
    %cst_112 = arith.constant dense<0.000000e+00> : vector<16x32xf32>
    %190 = tpu.matmul %189, %187, %cst_112 {dimension_numbers = #tpu.dot_dimension_numbers<[1], [0], [0], [1], [0, 0, 1, 1], [], []>} : vector<16x16xf32>, vector<16x32xf32>, vector<16x32xf32> -> vector<16x32xf32>
    %191 = tpu.concatenate %181, %190 in 0 : vector<16x32xf32>, vector<16x32xf32> -> vector<32x32xf32>
    %c1_113 = arith.constant 1 : index
    %c0_114 = arith.constant 0 : index
    %c0_115 = arith.constant 0 : index
    %192 = vector.load %arg11[%c1_113, %c0_114, %c0_115] : memref<2x32x32xf32, #tpu.memory_space<vmem>>, vector<1x32x32xf32>
    %193 = vector.shape_cast %192 : vector<1x32x32xf32> to vector<32x32xf32>
    %cst_116 = arith.constant dense<0.000000e+00> : vector<32x32xf32>
    %194 = tpu.matmul %191, %193, %cst_116 {dimension_numbers = #tpu.dot_dimension_numbers<[1], [0], [0], [1], [0, 0, 1, 1], [], []>} : vector<32x32xf32>, vector<32x32xf32>, vector<32x32xf32> -> vector<32x32xf32>
    %195 = arith.addf %143, %194 : vector<32x32xf32>
    %c1_117 = arith.constant 1 : index
    %c0_118 = arith.constant 0 : index
    %c0_119 = arith.constant 0 : index
    %196 = vector.load %arg12[%c1_117, %c0_118, %c0_119] : memref<2x1x32xf32, #tpu.memory_space<vmem>>, vector<1x1x32xf32>
    %197 = vector.shape_cast %196 : vector<1x1x32xf32> to vector<1x32xf32>
    %198 = vector.broadcast %197 : vector<1x32xf32> to vector<32x32xf32>
    %199 = arith.addf %195, %198 : vector<32x32xf32>
    %c1_120 = arith.constant 1 : index
    %c0_121 = arith.constant 0 : index
    %c0_122 = arith.constant 0 : index
    %200 = vector.load %arg13[%c1_120, %c0_121, %c0_122] : memref<2x1x32xf32, #tpu.memory_space<vmem>>, vector<1x1x32xf32>
    %201 = vector.shape_cast %200 : vector<1x1x32xf32> to vector<1x32xf32>
    %c1_123 = arith.constant 1 : index
    %c0_124 = arith.constant 0 : index
    %c0_125 = arith.constant 0 : index
    %202 = vector.load %arg14[%c1_123, %c0_124, %c0_125] : memref<2x1x32xf32, #tpu.memory_space<vmem>>, vector<1x1x32xf32>
    %203 = vector.shape_cast %202 : vector<1x1x32xf32> to vector<1x32xf32>
    %cst_126 = arith.constant dense<0.000000e+00> : vector<32xf32>
    %204 = vector.multi_reduction <add>, %199, %cst_126 [1] : vector<32x32xf32> to vector<32xf32>
    %205 = vector.shape_cast %204 : vector<32xf32> to vector<32x1xf32>
    %cst_127 = arith.constant 3.200000e+01 : f32
    %206 = vector.broadcast %cst_127 : f32 to vector<32x1xf32>
    %207 = arith.divf %205, %206 : vector<32x1xf32>
    %208 = vector.broadcast %207 : vector<32x1xf32> to vector<32x32xf32>
    %209 = arith.subf %199, %208 : vector<32x32xf32>
    %210 = arith.mulf %209, %209 : vector<32x32xf32>
    %cst_128 = arith.constant dense<0.000000e+00> : vector<32xf32>
    %211 = vector.multi_reduction <add>, %210, %cst_128 [1] : vector<32x32xf32> to vector<32xf32>
    %212 = vector.shape_cast %211 : vector<32xf32> to vector<32x1xf32>
    %cst_129 = arith.constant 3.200000e+01 : f32
    %213 = vector.broadcast %cst_129 : f32 to vector<32x1xf32>
    %214 = arith.divf %212, %213 : vector<32x1xf32>
    %215 = vector.broadcast %207 : vector<32x1xf32> to vector<32x32xf32>
    %216 = arith.subf %199, %215 : vector<32x32xf32>
    %cst_130 = arith.constant 9.99999974E-6 : f32
    %217 = vector.broadcast %cst_130 : f32 to vector<32x1xf32>
    %218 = arith.addf %214, %217 : vector<32x1xf32>
    %219 = math.rsqrt %218 : vector<32x1xf32>
    %220 = vector.broadcast %219 : vector<32x1xf32> to vector<32x32xf32>
    %221 = arith.mulf %216, %220 : vector<32x32xf32>
    %222 = vector.broadcast %201 : vector<1x32xf32> to vector<32x32xf32>
    %223 = arith.mulf %221, %222 : vector<32x32xf32>
    %224 = vector.broadcast %203 : vector<1x32xf32> to vector<32x32xf32>
    %225 = arith.addf %223, %224 : vector<32x32xf32>
    %c1_131 = arith.constant 1 : index
    %c0_132 = arith.constant 0 : index
    %c0_133 = arith.constant 0 : index
    %226 = vector.load %arg15[%c1_131, %c0_132, %c0_133] : memref<2x32x128xf32, #tpu.memory_space<vmem>>, vector<1x32x128xf32>
    %227 = vector.shape_cast %226 : vector<1x32x128xf32> to vector<32x128xf32>
    %cst_134 = arith.constant dense<0.000000e+00> : vector<32x128xf32>
    %228 = tpu.matmul %225, %227, %cst_134 {dimension_numbers = #tpu.dot_dimension_numbers<[1], [0], [0], [1], [0, 0, 1, 1], [], []>} : vector<32x32xf32>, vector<32x128xf32>, vector<32x128xf32> -> vector<32x128xf32>
    %c1_135 = arith.constant 1 : index
    %c0_136 = arith.constant 0 : index
    %c0_137 = arith.constant 0 : index
    %229 = vector.load %arg16[%c1_135, %c0_136, %c0_137] : memref<2x1x128xf32, #tpu.memory_space<vmem>>, vector<1x1x128xf32>
    %230 = vector.shape_cast %229 : vector<1x1x128xf32> to vector<1x128xf32>
    %231 = vector.broadcast %230 : vector<1x128xf32> to vector<32x128xf32>
    %232 = arith.addf %228, %231 : vector<32x128xf32>
    %233 = arith.mulf %232, %232 : vector<32x128xf32>
    %234 = arith.mulf %232, %233 : vector<32x128xf32>
    %cst_138 = arith.constant 4.471500e-02 : f32
    %235 = vector.broadcast %cst_138 : f32 to vector<32x128xf32>
    %236 = arith.mulf %235, %234 : vector<32x128xf32>
    %237 = arith.addf %232, %236 : vector<32x128xf32>
    %cst_139 = arith.constant 0.797884583 : f32
    %238 = vector.broadcast %cst_139 : f32 to vector<32x128xf32>
    %239 = arith.mulf %238, %237 : vector<32x128xf32>
    %240 = math.tanh %239 : vector<32x128xf32>
    %cst_140 = arith.constant 1.000000e+00 : f32
    %241 = vector.broadcast %cst_140 : f32 to vector<32x128xf32>
    %242 = arith.addf %241, %240 : vector<32x128xf32>
    %cst_141 = arith.constant 5.000000e-01 : f32
    %243 = vector.broadcast %cst_141 : f32 to vector<32x128xf32>
    %244 = arith.mulf %243, %242 : vector<32x128xf32>
    %245 = arith.mulf %232, %244 : vector<32x128xf32>
    %c1_142 = arith.constant 1 : index
    %c0_143 = arith.constant 0 : index
    %c0_144 = arith.constant 0 : index
    %246 = vector.load %arg17[%c1_142, %c0_143, %c0_144] : memref<2x128x32xf32, #tpu.memory_space<vmem>>, vector<1x128x32xf32>
    %247 = vector.shape_cast %246 : vector<1x128x32xf32> to vector<128x32xf32>
    %cst_145 = arith.constant dense<0.000000e+00> : vector<32x32xf32>
    %248 = tpu.matmul %245, %247, %cst_145 {dimension_numbers = #tpu.dot_dimension_numbers<[1], [0], [0], [1], [0, 0, 1, 1], [], []>} : vector<32x128xf32>, vector<128x32xf32>, vector<32x32xf32> -> vector<32x32xf32>
    %249 = arith.addf %199, %248 : vector<32x32xf32>
    %c1_146 = arith.constant 1 : index
    %c0_147 = arith.constant 0 : index
    %c0_148 = arith.constant 0 : index
    %250 = vector.load %arg18[%c1_146, %c0_147, %c0_148] : memref<2x1x32xf32, #tpu.memory_space<vmem>>, vector<1x1x32xf32>
    %251 = vector.shape_cast %250 : vector<1x1x32xf32> to vector<1x32xf32>
    %252 = vector.broadcast %251 : vector<1x32xf32> to vector<32x32xf32>
    %253 = arith.addf %249, %252 : vector<32x32xf32>
    %cst_149 = arith.constant dense<0.000000e+00> : vector<32x11xf32>
    %254 = tpu.matmul %253, %0, %cst_149 {dimension_numbers = #tpu.dot_dimension_numbers<[1], [1], [0], [0], [0, 0, 1, 0], [], []>} : vector<32x32xf32>, vector<11x32xf32>, vector<32x11xf32> -> vector<32x11xf32>
    %cst_150 = arith.constant dense<0xFF800000> : vector<32xf32>
    %255 = vector.multi_reduction <maximumf>, %254, %cst_150 [1] : vector<32x11xf32> to vector<32xf32>
    %256 = vector.shape_cast %255 : vector<32xf32> to vector<32x1xf32>
    %257 = vector.broadcast %256 : vector<32x1xf32> to vector<32x11xf32>
    %258 = arith.subf %254, %257 : vector<32x11xf32>
    %259 = math.exp %258 : vector<32x11xf32>
    %cst_151 = arith.constant dense<0.000000e+00> : vector<32xf32>
    %260 = vector.multi_reduction <add>, %259, %cst_151 [1] : vector<32x11xf32> to vector<32xf32>
    %261 = vector.shape_cast %260 : vector<32xf32> to vector<32x1xf32>
    %262 = math.log %261 : vector<32x1xf32>
    %c0_152 = arith.constant 0 : index
    %c0_153 = arith.constant 0 : index
    %263 = vector.load %arg2[%c0_152, %c0_153] : memref<32x1xi32, #tpu.memory_space<vmem>>, vector<32x1xi32>
    %264 = tpu.iota {dimensions = array<i32: 1>} : vector<32x11xi32>
    %265 = vector.broadcast %263 : vector<32x1xi32> to vector<32x11xi32>
    %266 = arith.cmpi eq, %264, %265 : vector<32x11xi32>
    %cst_154 = arith.constant 0.000000e+00 : f32
    %267 = vector.broadcast %cst_154 : f32 to vector<32x11xf32>
    %268 = arith.select %266, %254, %267 : vector<32x11xi1>, vector<32x11xf32>
    %cst_155 = arith.constant dense<0.000000e+00> : vector<32xf32>
    %269 = vector.multi_reduction <add>, %268, %cst_155 [1] : vector<32x11xf32> to vector<32xf32>
    %270 = vector.shape_cast %269 : vector<32xf32> to vector<32x1xf32>
    %271 = arith.subf %270, %256 : vector<32x1xf32>
    %272 = arith.subf %271, %262 : vector<32x1xf32>
    %273 = math.exp %272 : vector<32x1xf32>
    %cst_156 = arith.constant 9.99999997E-7 : f32
    %274 = vector.broadcast %cst_156 : f32 to vector<32x1xf32>
    %275 = arith.addf %273, %274 : vector<32x1xf32>
    %276 = math.log %275 : vector<32x1xf32>
    %cst_157 = arith.constant 0.000000e+00 : f32
    %277 = vector.broadcast %cst_157 : f32 to vector<32x1xf32>
    %278 = arith.subf %277, %276 : vector<32x1xf32>
    %cst_158 = arith.constant dense<0.000000e+00> : vector<1xf32>
    %279 = vector.multi_reduction <add>, %278, %cst_158 [0] : vector<32x1xf32> to vector<1xf32>
    %280 = vector.shape_cast %279 : vector<1xf32> to vector<1x1xf32>
    %cst_159 = arith.constant 3.125000e-02 : f32
    %281 = vector.broadcast %cst_159 : f32 to vector<1x1xf32>
    %282 = arith.mulf %280, %281 : vector<1x1xf32>
    %c0_160 = arith.constant 0 : index
    %c0_161 = arith.constant 0 : index
    %283 = vector.load %arg19[%c0_160, %c0_161] : memref<1x1xf32, #tpu.memory_space<vmem>>, vector<1x1xf32>
    tpu.vector_store %arg19[%c0_160, %c0_161], %282 {strides = array<i32>} : memref<1x1xf32, #tpu.memory_space<vmem>>, vector<1x1xf32>,
    return
  }
}

</mosaic_0001>

<bundles_post_ra>
// kernel: forward.1
= control target key start
LH: loop header
LB: loop body
LE: loop exit
PB: predicated region body
PF: predicated region fallthrough
CT: control target
= control target key end

     0   :  { %s3771_s0 = inlined_call_operand.vmem [shape: s32[32,1], index: 0, kind: input, shape index: {}]   ;;  %s3772_s1 = inlined_call_operand.vmem [shape: s32[32,1], index: 1, kind: input, shape index: {}]   ;;  %s3773_s2 = inlined_call_operand.vmem [shape: s32[32,1], index: 2, kind: input, shape index: {}]   ;;  %s3774_s3 = inlined_call_operand.vmem [shape: f32[32,1], index: 3, kind: input, shape index: {}]   ;;  %s3775_s4 = inlined_call_operand.vmem [shape: f32[2,16,16], index: 4, kind: input, shape index: {}]   ;;  %s3776_s5 = inlined_call_operand.vmem [shape: f32[2,16,16], index: 5, kind: input, shape index: {}]   ;;  %s3777_s6 = inlined_call_operand.vmem [shape: f32[11,32], index: 6, kind: input, shape index: {}]   ;;  %s3778_s7 = inlined_call_operand.vmem [shape: f32[8,32], index: 7, kind: input, shape index: {}]   ;;  %s3779_s8 = inlined_call_operand.vmem [shape: f32[2,1,32], index: 8, kind: input, shape index: {}]   ;;  %s3780_s9 = inlined_call_operand.vmem [shape: f32[2,1,32], index: 9, kind: input, shape index: {}]   ;;  %s3781_s10 = inlined_call_operand.vmem [shape: f32[2,3,32], index: 10, kind: input, shape index: {}]   ;;  %s3782_s11 = inlined_call_operand.vmem [shape: f32[2,32,32], index: 11, kind: input, shape index: {}]   ;;  %s3783_s12 = inlined_call_operand.vmem [shape: f32[2,1,32], index: 12, kind: input, shape index: {}]   ;;  %s3784_s13 = inlined_call_operand.vmem [shape: f32[2,1,32], index: 13, kind: input, shape index: {}]   ;;  %s3785_s14 = inlined_call_operand.vmem [shape: f32[2,1,32], index: 14, kind: input, shape index: {}]   ;;  %s3786_s15 = inlined_call_operand.vmem [shape: f32[2,32,128], index: 15, kind: input, shape index: {}]   ;;  %s3787_s16 = inlined_call_operand.vmem [shape: f32[2,1,128], index: 16, kind: input, shape index: {}]   ;;  %s3788_s17 = inlined_call_operand.vmem [shape: f32[2,128,32], index: 17, kind: input, shape index: {}]   ;;  %s3789_s18 = inlined_call_operand.vmem [shape: f32[2,1,32], index: 18, kind: input, shape index: {}]   ;;  %s3790_s19 = inlined_call_operand.hbm [shape: f32[1,1], index: 19, kind: output, shape index: {}]  }
   0x1   :  { %3796 = sst [smem:[#allocation5_spill]] %s3771_s0 }
   0x2   :  { %3797 = sst [smem:[#allocation6_spill]] %s3772_s1 }
   0x3   :  { %3798 = sst [smem:[#allocation7_spill]] %s3773_s2 }
   0x4   :  { %3799 = sst [smem:[#allocation8_spill]] %s3774_s3 }
   0x5   :  { %3800 = sst [smem:[#allocation9_spill]] %s3785_s14 }
   0x6   :  { %s3801_s20 = sld [smem:[#allocation6_spill]]  ;;  %v3072_v2 = vmov 0   ;;  %vm231_vm0 = vcmask 1042432   ;;  %v64_v5 = vld [vmem:[%s3777_s6 + $0x8] sm:$0x7]  ;;  %v65_v6 = vld [vmem:[%s3778_s7] sm:$0xff] }
   0x7   :  { %s3802_s14 = sld [smem:[#allocation5_spill]]  ;;  %2967 = vset.pattern.permute.xlu1 %v3072_v2  ;;  %2966 = vset.pattern.permute.xlu0 %v3072_v2  ;;  %v63_v7 = vld [vmem:[%s3777_s6] sm:$0xff] }
   0x8   :  { %2739 = vmatprep.subr.msk.mxu1 %vm231_vm0, %v64_v5 }
   0xc   :  { %v70_v0 = vld [vmem:[%s3801_s20] sm:$0xff]  ;;  %v71_v3 = vld [vmem:[%s3801_s20 + $0x8] sm:$0xff] }
   0xd   :  { %v66_v1 = vld [vmem:[%s3802_s14] sm:$0xff]  ;;  %97 = vperm.xlu0 %2966, %v70_v0   ;;  %v67_v4 = vld [vmem:[%s3802_s14 + $0x8] sm:$0xff] }
   0xe   :  { %77 = vperm.xlu1 %2967, %v66_v1  }
   0xf   :  { %24 = vsyncpa [#allocation3], 0  ;;  %2740 = vmatpush3.msk.msra.mxu1 %vm231_vm0, %v64_v5  ;;  %2731 = vmatprep.subr.mxu0 %v65_v6  ;;  %v72_v8 = vld [vmem:[%s3801_s20 + $0x10] sm:$0xff]  ;;  %v73_v9 = vld [vmem:[%s3801_s20 + $0x18] sm:$0xff]  ;;  %v74_v12 = vlaneseq  ;;  %vm116_vm1 = vcmask 64512   ;;  %vm218_vm2 = vcmask 89088  }
  0x10   :  { %2741 = vmatprep.subr.mxu1 %v63_v7  ;;  %2732 = vmatpush3.msra.mxu0 %v65_v6  ;;  %v68_v10 = vld [vmem:[%s3802_s14 + $0x10] sm:$0xff]  ;;  %v69_v11 = vld [vmem:[%s3802_s14 + $0x18] sm:$0xff]  ;;  %v3073_v16 = vmov 0.0   ;;  %vm360_vm11 = vcmask 261120   ;;  %s3803_s24 = sld [smem:[#allocation8_spill]]  ;;  %vm435_vm14 = vcmask 23552  }
  0x11   :  { %100 = vperm.xlu0 %2966, %v71_v3   ;;  %2742 = vmatpush3.msra.mxu1 %v63_v7  ;;  %v3210_v13 = vand.u32 127, %v74_v12  ;;  %v434_v62 = vld [vmem:[%s3781_s10] sm:$0x7]  ;;  %vm538_vm15 = vcmask 130048   ;;  %s3804_s14 = sld [smem:[#allocation9_spill]]  ;;  %s3074_s21 = smov [#allocation2]  }
  0x12   :  { %80 = vperm.xlu1 %2967, %v67_v4   ;;  %2749 = vmatprep.subr.msk.mxu0 %vm231_vm0, %v434_v62  ;;  %v3268_v63 = vld [vmem:[%s3776_s5] sm:$0xff]  ;;  %s3805_s27 = sld [smem:[#allocation7_spill]] }
  0x13   :  { %vm324_vm12 = vcmp.ge.s32.totalorder %v3210_v13, 1  ;;  %vm349_vm13 = vcmp.ge.s32.totalorder %v3210_v13, 2 }
  0x15   :  { %103 = vperm.xlu0 %2966, %v72_v8  }
  0x16   :  { %106 = vperm.xlu1 %2967, %v73_v9   ;;  %v320_v41 = vld [vmem:[%s3803_s24] sm:$0xff]  ;;  %v321_v61 = vld [vmem:[%s3803_s24 + $0x8] sm:$0xff] }
  0x19   :  { %83 = vperm.xlu0 %2966, %v68_v10   ;;  %v322_v10 = vld [vmem:[%s3803_s24 + $0x10] sm:$0xff] }
  0x1a   :  { %86 = vperm.xlu1 %2967, %v69_v11  }
  0x88   :  { %v98_v14 = vpop.permute.xlu0 %97 }
  0x89   :  { %v78_v15 = vpop.permute.xlu1 %77  ;;  %vm108_vm3 = vcmp.eq.s32.totalorder %v3210_v13, %v98_v14 }
  0x8a   :  { %vm88_vm4 = vcmp.eq.s32.totalorder %v3210_v13, %v78_v15  ;;  %v112_v17 = vsel %vm108_vm3, 1.0, %v3073_v16 }
  0x8b   :  { %v92_v18 = vsel %vm88_vm4, 1.0, %v3073_v16  ;;  %2733 = vmatprep.mubr.msk.f32.mxu0 %vm116_vm1, %v112_v17 }
  0x8c   :  { %2743 = vmatprep.mubr.msk.f32.mxu1 %vm218_vm2, %v92_v18  ;;  %v101_v19 = vpop.permute.xlu0 %100 }
  0x8d   :  { %v81_v20 = vpop.permute.xlu1 %80  ;;  %vm109_vm5 = vcmp.eq.s32.totalorder %v3210_v13, %v101_v19 }
  0x8e   :  { %vm89_vm6 = vcmp.eq.s32.totalorder %v3210_v13, %v81_v20  ;;  %v113_v21 = vsel %vm109_vm5, 1.0, %v3073_v16 }
  0x8f   :  { %v93_v22 = vsel %vm89_vm6, 1.0, %v3073_v16  ;;  %2734 = vmatmul.mubr.msk.f32.vlgmr.msra.gmra.mxu0 %vm116_vm1, %v113_v21 }
  0x90   :  { %2744 = vmatmul.mubr.msk.f32.vlgmr.msra.gmra.mxu1 %vm218_vm2, %v93_v22  ;;  %v104_v23 = vpop.permute.xlu0 %103  ;;  %2750 = vmatpush3.msk.msra.mxu0 %vm231_vm0, %v434_v62 }
  0x91   :  { %v107_v24 = vpop.permute.xlu1 %106  ;;  %vm110_vm7 = vcmp.eq.s32.totalorder %v3210_v13, %v104_v23  ;;  %v2502_v23 = vld [vmem:[%s3779_s8] ss:$0 sm:$0xff] }
  0x92   :  { %vm111_vm8 = vcmp.eq.s32.totalorder %v3210_v13, %v107_v24  ;;  %v114_v25 = vsel %vm110_vm7, 1.0, %v3073_v16 }
  0x93   :  { %v115_v26 = vsel %vm111_vm8, 1.0, %v3073_v16  ;;  %2736 = vmatprep.mubr.msk.f32.mxu0 %vm116_vm1, %v114_v25  ;;  %v2503_v25 = vld [vmem:[%s3780_s9] ss:$0 sm:$0xff] }
  0x94   :  { %v84_v27 = vpop.permute.xlu0 %83  ;;  %2737 = vmatmul.mubr.msk.f32.gmra.mxu0 %vm116_vm1, %v115_v26 }
  0x95   :  { %v87_v28 = vpop.permute.xlu1 %86  ;;  %vm90_vm9 = vcmp.eq.s32.totalorder %v3210_v13, %v84_v27 }
  0x96   :  { %vm91_vm10 = vcmp.eq.s32.totalorder %v3210_v13, %v87_v28  ;;  %v94_v29 = vsel %vm90_vm9, 1.0, %v3073_v16 }
  0x97   :  { %v95_v30 = vsel %vm91_vm10, 1.0, %v3073_v16  ;;  %2746 = vmatprep.mubr.msk.f32.mxu1 %vm218_vm2, %v94_v29 }
  0x98   :  { %2747 = vmatmul.mubr.msk.f32.gmra.mxu1 %vm218_vm2, %v95_v30 }
  0x99   :  { %2761 = vmatprep.mubr.msk.f32.mxu1 %vm538_vm15, %v3268_v63 }
 0x14f   :  { %v2735_v31 = vpop.f32.mrf.mxu0 }
 0x150   :  { %v2745_v32 = vpop.f32.mrf.mxu1  ;;  %v215_v33 = vmul.f32 0.1, %v2735_v31 }
 0x151   :  { %v195_v34 = vpop.f32.mrf.mxu0 }
 0x152   :  { %v3228_v35 = vadd.f32 %v2745_v32, %v215_v33  ;;  %v214_v36 = vmul.f32 0.1, %v195_v34  ;;  %v301_v37 = vpop.f32.mrf.mxu1  ;;  %v3298_v32 = vld [vmem:[%s3776_s5 + $0x8] sm:$0xff] }
 0x154   :  { %v3230_v38 = vadd.f32 %v301_v37, %v214_v36  ;;  %v364_v39 = vsel %vm360_vm11, %v3228_v35, 0.0  ;;  %v2738_v42 = vpop.f32.mrf.mxu0 }
 0x155   :  { %365 = vadd.xlane.f32.xlu0 %v364_v39  ;;  %v217_v44 = vmul.f32 0.1, %v2738_v42 }
 0x156   :  { %v361_v40 = vsel %vm360_vm11, %v3230_v38, 0.0  ;;  %v205_v0 = vpop.f32.mrf.mxu0 }
 0x157   :  { %362 = vadd.xlane.f32.xlu1 %v361_v40  ;;  %v216_v4 = vmul.f32 0.1, %v205_v0 }
 0x158   :  { %v2748_v43 = vpop.f32.mrf.mxu1 }
 0x159   :  { %v3239_v45 = vadd.f32 %v2748_v43, %v217_v44 }
 0x15a   :  { %v311_v3 = vpop.f32.mrf.mxu1 }
 0x15b   :  { %v370_v46 = vsel %vm360_vm11, %v3239_v45, 0.0  ;;  %v3273_v6 = vadd.f32 %v311_v3, %v216_v4 }
 0x15d   :  { %v367_v9 = vsel %vm360_vm11, %v3273_v6, 0.0 }
 0x168   :  { %327 = vperm.xlu1 %2967, %v320_v41  }
 0x18c   :  { %371 = vadd.xlane.f32.xlu1 %v370_v46 }
 0x1de   :  { %v366_v47 = vpop.xlane.xlu0 %365 }
 0x1df   :  { %v375_v48 = vmul.f32 0.03125, %v366_v47 }
 0x1e0   :  { %v363_v49 = vpop.xlane.xlu1 %362 }
 0x1e1   :  { %v379_v50 = vsub.f32 %v3228_v35, %v375_v48  ;;  %v374_v51 = vmul.f32 0.03125, %v363_v49 }
 0x1e3   :  { %v378_v52 = vsub.f32 %v3230_v38, %v374_v51  ;;  %v383_v53 = vmul.f32 %v379_v50, %v379_v50 }
 0x1e4   :  { %v328_v54 = vpop.permute.xlu1 %327 }
 0x1e5   :  { %v345_v55 = vsel %vm324_vm12, %v328_v54, 1.0  ;;  %v389_v56 = vsel %vm360_vm11, %v383_v53, 0.0  ;;  %v382_v57 = vmul.f32 %v378_v52, %v378_v52  ;;  %v3318_v53 = vld [vmem:[%s3775_s4] sm:$0xff] }
 0x1e6   :  { %v350_v58 = vmul.f32 %v345_v55, %v328_v54  ;;  %390 = vadd.xlane.f32.xlu0 %v389_v56 }
 0x1e7   :  { %v386_v60 = vsel %vm360_vm11, %v382_v57, 0.0 }
 0x1e8   :  { %v3252_v59 = vsel %vm349_vm13, %v350_v58, %v345_v55 }
 0x1e9   :  { %2751 = vmatprep.mubr.msk.f32.mxu0 %vm435_vm14, %v3252_v59 }
 0x1ea   :  { %387 = vadd.xlane.f32.xlu0 %v386_v60 }
 0x200   :  { %332 = vperm.xlu0 %2966, %v321_v61   ;;  %v3327_v61 = vld [vmem:[%s3776_s5 + $0x10] sm:$0xff] }
 0x215   :  { %v372_v1 = vpop.xlane.xlu1 %371 }
 0x216   :  { %v377_v2 = vmul.f32 0.03125, %v372_v1 }
 0x218   :  { %v381_v5 = vsub.f32 %v3239_v45, %v377_v2 }
 0x21a   :  { %v385_v7 = vmul.f32 %v381_v5, %v381_v5 }
 0x21c   :  { %v395_v8 = vsel %vm360_vm11, %v385_v7, 0.0 }
 0x21d   :  { %396 = vadd.xlane.f32.xlu1 %v395_v8 }
 0x21f   :  { %368 = vadd.xlane.f32.xlu0 %v367_v9 }
 0x22e   :  { %337 = vperm.xlu1 %2967, %v322_v10  }
 0x26f   :  { %v391_v11 = vpop.xlane.xlu0 %390 }
 0x270   :  { %v399_v12 = vmul.f32 0.03125, %v391_v11  ;;  %v3337_v11 = vld [vmem:[%s3776_s5 + $0x18] sm:$0xff]  ;;  %s2485_s5 = sshll.u32 %s3074_s21, 4  ;;  %s2486_s5 = int_to_ptr.vmem [resolvable:$true] %s2485_s5 }
 0x271   :  { %s3050_s1 = scalar_lea.vmem %s2486_s5, 16  ;;  %s3054_s7 = scalar_lea.vmem %s2486_s5, 32 }
 0x272   :  { %v403_v14 = vadd.f32 1e-05, %v399_v12  ;;  %v3342_v12 = vld [vmem:[%s3775_s4 + $0x8] sm:$0xff]  ;;  %p3051_p0 = scmp.ne.s32.totalorder %s2486_s5, %s3050_s1  ;;  %p3055_p1 = scmp.lt.s32.totalorder %s2486_s5, %s2486_s5 }
 0x273   :  { %v388_v15 = vpop.xlane.xlu0 %387  ;;  %p3056_p2 = scmp.lt.s32.totalorder %s3054_s7, %s3050_s1 }
 0x274   :  { %2968 = vrsqrt.f32 %v403_v14  ;;  %v398_v16 = vmul.f32 0.03125, %v388_v15  ;;  %v878_v14 = vld [vmem:[%s3782_s11 + $0x18] sm:$0xff]  ;;  %v877_v15 = vld [vmem:[%s3782_s11 + $0x10] sm:$0xff] }
 0x275   :  { %p3057_p3 = por %p3056_p2, %p3055_p1 }
 0x276   :  { %v402_v17 = vadd.f32 1e-05, %v398_v16  ;;  %v876_v16 = vld [vmem:[%s3782_s11 + $0x8] sm:$0xff] }
 0x277   :  { %p3058_p4 = pnand %p3057_p3, %p3051_p0 }
 0x278   :  { %2970 = vrsqrt.f32 %v402_v17  ;;  %v875_v17 = vld [vmem:[%s3782_s11] sm:$0xff] }
 0x27b   :  { %v333_v18 = vpop.permute.xlu0 %332 }
 0x27c   :  { %v346_v19 = vsel %vm324_vm12, %v333_v18, 1.0 }
 0x27d   :  { %v351_v20 = vmul.f32 %v346_v19, %v333_v18  ;;  %v3363_v18 = vld [vmem:[%s3775_s4 + $0x10] sm:$0xff] }
 0x27f   :  { %v3285_v21 = vsel %vm349_vm13, %v351_v20, %v346_v19 }
 0x280   :  { %2752 = vmatmul.mubr.msk.f32.vlgmr.msra.gmra.mxu0 %vm435_vm14, %v3285_v21 }
 0x281   :  { %v2969_v22 = vpop.eup %2968 }
 0x282   :  { %v411_v24 = vmul.f32 %v2969_v22, %v379_v50 }
 0x284   :  { %v421_v26 = vmul.f32 %v2502_v23, %v411_v24 }
 0x285   :  { %v2971_v27 = vpop.eup %2970 }
 0x286   :  { %v431_v28 = vadd.f32 %v2503_v25, %v421_v26  ;;  %v410_v29 = vmul.f32 %v2971_v27, %v378_v52  ;;  %v323_v52 = vld [vmem:[%s3803_s24 + $0x18] sm:$0xff] }
 0x288   :  { %2757 = vmatprep.subr.mxu1 %v431_v28  ;;  %v420_v30 = vmul.f32 %v2502_v23, %v410_v29  ;;  %v2538_v29 = vld [vmem:[%s3781_s10 + $0x4] sm:$0x7] }
 0x289   :  { %2758 = vmatpush3.msra.mxu1 %v431_v28  ;;  %v3371_v28 = vld [vmem:[%s3775_s4 + $0x18] sm:$0xff] }
 0x28a   :  { %v430_v31 = vadd.f32 %v2503_v25, %v420_v30 }
 0x28c   :  { %2759 = vmatprep.subr.mxu1 %v430_v31 }
 0x28d   :  { %2760 = vmatpush3.msra.mxu1 %v430_v31  ;;  %v2525_v31 = vld [vmem:[%s3783_s12] ss:$0 sm:$0xff] }
 0x28e   :  { %2762 = vmatmul.mubr.msk.f32.vlgmr.msra.gmra.mxu1 %vm538_vm15, %v3298_v32 }
 0x28f   :  { %2768 = vmatprep.mubr.msk.f32.mxu1 %vm538_vm15, %v3318_v53 }
 0x2a6   :  { %v397_v33 = vpop.xlane.xlu1 %396 }
 0x2a7   :  { %v401_v34 = vmul.f32 0.03125, %v397_v33 }
 0x2a8   :  { %v369_v36 = vpop.xlane.xlu0 %368 }
 0x2a9   :  { %v405_v37 = vadd.f32 1e-05, %v401_v34  ;;  %v376_v39 = vmul.f32 0.03125, %v369_v36 }
 0x2aa   :  { %v338_v40 = vpop.permute.xlu1 %337 }
 0x2ab   :  { %2972 = vrsqrt.f32 %v405_v37  ;;  %v380_v41 = vsub.f32 %v3273_v6, %v376_v39  ;;  %v347_v42 = vsel %vm324_vm12, %v338_v40, 1.0 }
 0x2ac   :  { %v352_v43 = vmul.f32 %v347_v42, %v338_v40 }
 0x2ad   :  { %v384_v44 = vmul.f32 %v380_v41, %v380_v41 }
 0x2ae   :  { %v3307_v46 = vsel %vm349_vm13, %v352_v43, %v347_v42 }
 0x2af   :  { %2754 = vmatprep.mubr.msk.f32.mxu0 %vm435_vm14, %v3307_v46  ;;  %v392_v47 = vsel %vm360_vm11, %v384_v44, 0.0 }
 0x2b0   :  { %393 = vadd.xlane.f32.xlu0 %v392_v47 }
 0x2b8   :  { %v2973_v48 = vpop.eup %2972 }
 0x2b9   :  { %v413_v49 = vmul.f32 %v2973_v48, %v381_v5 }
 0x2bb   :  { %v423_v50 = vmul.f32 %v2502_v23, %v413_v49 }
 0x2bd   :  { %v433_v51 = vadd.f32 %v2503_v25, %v423_v50  ;;  %v1068_v50 = vld [vmem:[%s3786_s15 + $0x18] sm:$0xff] }
 0x2bf   :  { %2771 = vmatprep.subr.mxu0 %v433_v51 }
 0x2c0   :  { %2772 = vmatpush3.msra.mxu0 %v433_v51  ;;  %v1067_v51 = vld [vmem:[%s3786_s15 + $0x10] sm:$0xff] }
 0x2c6   :  { %342 = vperm.xlu0 %2966, %v323_v52   ;;  %v1066_v52 = vld [vmem:[%s3786_s15 + $0x8] sm:$0xff] }
 0x339   :  { %v394_v54 = vpop.xlane.xlu0 %393 }
 0x33a   :  { %v400_v55 = vmul.f32 0.03125, %v394_v54  ;;  %v1065_v54 = vld [vmem:[%s3786_s15] sm:$0xff] }
 0x33c   :  { %v404_v56 = vadd.f32 1e-05, %v400_v55 }
 0x33e   :  { %2974 = vrsqrt.f32 %v404_v56 }
 0x340   :  { %v2753_v1 = vpop.f32.mrf.mxu0 }
 0x341   :  { %v343_v57 = vpop.permute.xlu0 %342 }
 0x342   :  { %v348_v58 = vsel %vm324_vm12, %v343_v57, 1.0  ;;  %v517_v7 = vpop.f32.mrf.mxu0 }
 0x343   :  { %v353_v60 = vmul.f32 %v348_v58, %v343_v57 }
 0x345   :  { %v357_v62 = vsel %vm349_vm13, %v353_v60, %v348_v58 }
 0x346   :  { %2755 = vmatmul.mubr.msk.f32.gmra.mxu0 %vm435_vm14, %v357_v62 }
 0x347   :  { %2775 = vmatprep.mubr.msk.f32.mxu0 %vm538_vm15, %v3327_v61 }
 0x34b   :  { %v2975_v0 = vpop.eup %2974 }
 0x34c   :  { %v412_v2 = vmul.f32 %v2975_v0, %v380_v41 }
 0x34e   :  { %v2763_v3 = vpop.f32.mrf.mxu1  ;;  %v422_v4 = vmul.f32 %v2502_v23, %v412_v2 }
 0x34f   :  { %v621_v5 = vmul.f32 %v2763_v3, %v2753_v1 }
 0x350   :  { %v611_v8 = vpop.f32.mrf.mxu1  ;;  %v432_v9 = vadd.f32 %v2503_v25, %v422_v4 }
 0x351   :  { %v620_v10 = vmul.f32 %v611_v8, %v517_v7  ;;  %2764 = vmatprep.subr.mxu1 %v621_v5 }
 0x352   :  { %2765 = vmatpush3.msra.mxu1 %v621_v5  ;;  %2773 = vmatprep.subr.mxu0 %v432_v9 }
 0x353   :  { %2766 = vmatprep.subr.mxu1 %v620_v10  ;;  %2774 = vmatpush3.msra.mxu0 %v432_v9  ;;  %v3434_v9 = vld [vmem:[%s3784_s13] ss:$0 sm:$0xff] }
 0x354   :  { %2767 = vmatpush3.msra.mxu1 %v620_v10  ;;  %2776 = vmatmul.mubr.msk.f32.vlgmr.msra.gmra.mxu0 %vm538_vm15, %v3337_v11 }
 0x355   :  { %2769 = vmatmul.mubr.msk.f32.vlgmr.msra.gmra.mxu1 %vm538_vm15, %v3342_v12  ;;  %2785 = vmatprep.subr.mxu0 %v878_v14 }
 0x356   :  { %2786 = vmatpush3.msra.mxu0 %v878_v14  ;;  %2782 = vmatprep.mubr.msk.f32.mxu1 %vm538_vm15, %v3363_v18 }
 0x357   :  { %2787 = vmatprep.subr.mxu0 %v877_v15 }
 0x358   :  { %2788 = vmatpush3.msra.mxu0 %v877_v15 }
 0x359   :  { %2789 = vmatprep.subr.mxu0 %v876_v16 }
 0x35a   :  { %2790 = vmatpush3.msra.mxu0 %v876_v16  ;;  %v3440_v16 = vld [vmem:[%s3804_s14] ss:$0 sm:$0xff] }
 0x35b   :  { %2791 = vmatprep.subr.mxu0 %v875_v17 }
 0x35c   :  { %2792 = vmatpush3.msra.mxu0 %v875_v17 }
 0x35d   :  { %2799 = vmatprep.subr.mxu0 %v1068_v50 }
 0x406   :  { %v2756_v19 = vpop.f32.mrf.mxu0 }
 0x408   :  { %v527_v20 = vpop.f32.mrf.mxu0 }
 0x414   :  { %v2777_v22 = vpop.f32.mrf.mxu0 }
 0x415   :  { %v790_v23 = vmul.f32 %v2777_v22, %v2756_v19  ;;  %v2770_v24 = vpop.f32.mrf.mxu1 }
 0x416   :  { %v780_v25 = vpop.f32.mrf.mxu0 }
 0x417   :  { %v789_v26 = vmul.f32 %v780_v25, %v527_v20  ;;  %v696_v27 = vpop.f32.mrf.mxu1  ;;  %2778 = vmatprep.subr.mxu1 %v790_v23 }
 0x418   :  { %2779 = vmatpush3.msra.mxu1 %v790_v23  ;;  %2793 = vmatprep.mubr.msk.f32.mxu0 %vm360_vm11, %v696_v27 }
 0x419   :  { %2780 = vmatprep.subr.mxu1 %v789_v26  ;;  %2794 = vmatmul.mubr.msk.f32.vlgmr.msra.gmra.mxu0 %vm360_vm11, %v2770_v24 }
 0x41a   :  { %2781 = vmatpush3.msra.mxu1 %v789_v26  ;;  %2800 = vmatpush3.msra.mxu0 %v1068_v50 }
 0x41b   :  { %2783 = vmatmul.mubr.msk.f32.vlgmr.msra.gmra.mxu1 %vm538_vm15, %v3371_v28  ;;  %2851 = vmatprep.subr.msk.mxu1 %vm231_vm0, %v2538_v29 }
 0x41c   :  { %2853 = vmatprep.mubr.msk.f32.mxu1 %vm435_vm14, %v3252_v59  ;;  %2852 = vmatpush3.msk.msra.mxu1 %vm231_vm0, %v2538_v29 }
 0x41d   :  { %2801 = vmatprep.subr.mxu0 %v1067_v51 }
 0x41e   :  { %2802 = vmatpush3.msra.mxu0 %v1067_v51 }
 0x41f   :  { %2854 = vmatmul.mubr.msk.f32.vlgmr.msra.gmra.mxu1 %vm435_vm14, %v3285_v21  ;;  %2803 = vmatprep.subr.mxu0 %v1066_v52 }
 0x420   :  { %2856 = vmatprep.mubr.msk.f32.mxu1 %vm435_vm14, %v3307_v46  ;;  %2804 = vmatpush3.msra.mxu0 %v1066_v52 }
 0x421   :  { %2805 = vmatprep.subr.mxu0 %v1065_v54 }
 0x422   :  { %2806 = vmatpush3.msra.mxu0 %v1065_v54 }
 0x423   :  { %2857 = vmatmul.mubr.msk.f32.gmra.mxu1 %vm435_vm14, %v357_v62 }
 0x424   :  { %2863 = vmatprep.mubr.msk.f32.mxu1 %vm538_vm15, %v3268_v63 }
 0x4d9   :  { %v2795_v30 = vpop.f32.mrf.mxu0 }
 0x4da   :  { %v977_v59 = vadd.f32 %v2795_v30, %v3228_v35 }
 0x4db   :  { %v2784_v33 = vpop.f32.mrf.mxu1  ;;  %v957_v34 = vpop.f32.mrf.mxu0 }
 0x4dc   :  { %v3394_v36 = vadd.f32 %v2525_v31, %v977_v59  ;;  %v976_v21 = vadd.f32 %v957_v34, %v3230_v38  ;;  %v1223_v34 = vld [vmem:[%s3788_s17 + $0x70] sm:$0xff] }
 0x4dd   :  { %v866_v37 = vpop.f32.mrf.mxu1 }
 0x4de   :  { %v3397_v39 = vadd.f32 %v2525_v31, %v976_v21  ;;  %2796 = vmatprep.mubr.msk.f32.mxu0 %vm360_vm11, %v866_v37  ;;  %v996_v63 = vsel %vm360_vm11, %v3394_v36, 0.0  ;;  %v1222_v21 = vld [vmem:[%s3788_s17 + $0x68] sm:$0xff]  ;;  %v1221_v37 = vld [vmem:[%s3788_s17 + $0x60] sm:$0xff] }
 0x4df   :  { %997 = vadd.xlane.f32.xlu0 %v996_v63  ;;  %2797 = vmatmul.mubr.msk.f32.gmra.mxu0 %vm360_vm11, %v2784_v33  ;;  %v1224_v33 = vld [vmem:[%s3788_s17 + $0x78] sm:$0xff] }
 0x4e0   :  { %v993_v35 = vsel %vm360_vm11, %v3397_v39, 0.0  ;;  %2813 = vmatprep.subr.mxu0 %v1224_v33  ;;  %v1220_v63 = vld [vmem:[%s3788_s17 + $0x58] sm:$0xff] }
 0x4e1   :  { %994 = vadd.xlane.f32.xlu1 %v993_v35  ;;  %v1219_v35 = vld [vmem:[%s3788_s17 + $0x50] sm:$0xff] }
 0x568   :  { %v998_v40 = vpop.xlane.xlu0 %997 }
 0x569   :  { %v1006_v41 = vmul.f32 0.03125, %v998_v40  ;;  %v1218_v40 = vld [vmem:[%s3788_s17 + $0x48] sm:$0xff] }
 0x56a   :  { %v995_v42 = vpop.xlane.xlu1 %994 }
 0x56b   :  { %v1010_v38 = vsub.f32 %v3394_v36, %v1006_v41  ;;  %v1005_v43 = vmul.f32 0.03125, %v995_v42  ;;  %v1217_v41 = vld [vmem:[%s3788_s17 + $0x40] sm:$0xff]  ;;  %v1216_v42 = vld [vmem:[%s3788_s17 + $0x38] sm:$0xff] }
 0x56d   :  { %v1009_v44 = vsub.f32 %v3397_v39, %v1005_v43  ;;  %v1014_v46 = vmul.f32 %v1010_v38, %v1010_v38  ;;  %v1214_v43 = vld [vmem:[%s3788_s17 + $0x28] sm:$0xff] }
 0x56f   :  { %v1020_v47 = vsel %vm360_vm11, %v1014_v46, 0.0  ;;  %v1013_v48 = vmul.f32 %v1009_v44, %v1009_v44  ;;  %v1212_v46 = vld [vmem:[%s3788_s17 + $0x18] sm:$0xff] }
 0x570   :  { %1021 = vadd.xlane.f32.xlu0 %v1020_v47  ;;  %v1211_v47 = vld [vmem:[%s3788_s17 + $0x10] sm:$0xff] }
 0x571   :  { %v1017_v49 = vsel %vm360_vm11, %v1013_v48, 0.0  ;;  %v1210_v48 = vld [vmem:[%s3788_s17 + $0x8] sm:$0xff] }
 0x572   :  { %1018 = vadd.xlane.f32.xlu1 %v1017_v49  ;;  %v1209_v49 = vld [vmem:[%s3788_s17] sm:$0xff] }
 0x59f   :  { %v2798_v55 = vpop.f32.mrf.mxu0 }
 0x5a0   :  { %v979_v56 = vadd.f32 %v2798_v55, %v3239_v45 }
 0x5a1   :  { %v967_v57 = vpop.f32.mrf.mxu0 }
 0x5a2   :  { %v3422_v58 = vadd.f32 %v2525_v31, %v979_v56  ;;  %v978_v60 = vadd.f32 %v967_v57, %v3273_v6 }
 0x5a4   :  { %v3425_v62 = vadd.f32 %v2525_v31, %v978_v60  ;;  %v1002_v0 = vsel %vm360_vm11, %v3422_v58, 0.0 }
 0x5a5   :  { %1003 = vadd.xlane.f32.xlu0 %v1002_v0 }
 0x5a6   :  { %v999_v1 = vsel %vm360_vm11, %v3425_v62, 0.0 }
 0x5a7   :  { %1000 = vadd.xlane.f32.xlu1 %v999_v1  ;;  %v2528_v1 = vld [vmem:[%s3787_s16] ss:$0 sm:$0xff] }
 0x5f9   :  { %v1022_v2 = vpop.xlane.xlu0 %1021 }
 0x5fa   :  { %v1030_v3 = vmul.f32 0.03125, %v1022_v2 }
 0x5fb   :  { %v1019_v4 = vpop.xlane.xlu1 %1018 }
 0x5fc   :  { %v1034_v5 = vadd.f32 1e-05, %v1030_v3  ;;  %v1029_v45 = vmul.f32 0.03125, %v1019_v4 }
 0x5fe   :  { %2976 = vrsqrt.f32 %v1034_v5  ;;  %v1033_v7 = vadd.f32 1e-05, %v1029_v45 }
 0x600   :  { %2978 = vrsqrt.f32 %v1033_v7 }
 0x60b   :  { %v2977_v8 = vpop.eup %2976 }
 0x60c   :  { %v1042_v6 = vmul.f32 %v2977_v8, %v1010_v38  ;;  %v1215_v38 = vld [vmem:[%s3788_s17 + $0x30] sm:$0xff] }
 0x60d   :  { %v2979_v10 = vpop.eup %2978 }
 0x60e   :  { %v1041_v14 = vmul.f32 %v2979_v10, %v1009_v44  ;;  %v1052_v15 = vmul.f32 %v3434_v9, %v1042_v6  ;;  %v1213_v44 = vld [vmem:[%s3788_s17 + $0x20] sm:$0xff] }
 0x610   :  { %v1051_v17 = vmul.f32 %v3434_v9, %v1041_v14  ;;  %v1062_v20 = vadd.f32 %v3440_v16, %v1052_v15 }
 0x612   :  { %v1061_v19 = vadd.f32 %v3440_v16, %v1051_v17 }
 0x614   :  { %2807 = vmatprep.mubr.msk.f32.mxu0 %vm360_vm11, %v1061_v19 }
 0x615   :  { %2808 = vmatmul.mubr.msk.f32.vlgmr.msra.gmra.mxu0 %vm360_vm11, %v1062_v20 }
 0x616   :  { %2814 = vmatpush3.msra.mxu0 %v1224_v33 }
 0x617   :  { %2815 = vmatprep.subr.mxu0 %v1223_v34 }
 0x618   :  { %2816 = vmatpush3.msra.mxu0 %v1223_v34 }
 0x619   :  { %2817 = vmatprep.subr.mxu0 %v1222_v21 }
 0x61a   :  { %2818 = vmatpush3.msra.mxu0 %v1222_v21 }
 0x61b   :  { %2819 = vmatprep.subr.mxu0 %v1221_v37 }
 0x61c   :  { %2820 = vmatpush3.msra.mxu0 %v1221_v37 }
 0x61d   :  { %2821 = vmatprep.subr.mxu0 %v1220_v63 }
 0x61e   :  { %2822 = vmatpush3.msra.mxu0 %v1220_v63 }
 0x61f   :  { %2823 = vmatprep.subr.mxu0 %v1219_v35 }
 0x620   :  { %2824 = vmatpush3.msra.mxu0 %v1219_v35 }
 0x621   :  { %2825 = vmatprep.subr.mxu0 %v1218_v40 }
 0x622   :  { %2826 = vmatpush3.msra.mxu0 %v1218_v40 }
 0x623   :  { %2827 = vmatprep.subr.mxu0 %v1217_v41 }
 0x624   :  { %2828 = vmatpush3.msra.mxu0 %v1217_v41 }
 0x625   :  { %2829 = vmatprep.subr.mxu0 %v1216_v42 }
 0x626   :  { %2830 = vmatpush3.msra.mxu0 %v1216_v42 }
 0x627   :  { %2831 = vmatprep.subr.mxu0 %v1215_v38 }
 0x628   :  { %2832 = vmatpush3.msra.mxu0 %v1215_v38 }
 0x629   :  { %2833 = vmatprep.subr.mxu0 %v1214_v43 }
 0x62a   :  { %2834 = vmatpush3.msra.mxu0 %v1214_v43 }
 0x62b   :  { %2835 = vmatprep.subr.mxu0 %v1213_v44 }
 0x62c   :  { %2836 = vmatpush3.msra.mxu0 %v1213_v44 }
 0x62d   :  { %2837 = vmatprep.subr.mxu0 %v1212_v46 }
 0x62e   :  { %v1004_v22 = vpop.xlane.xlu0 %1003  ;;  %2838 = vmatpush3.msra.mxu0 %v1212_v46 }
 0x62f   :  { %v1008_v23 = vmul.f32 0.03125, %v1004_v22  ;;  %2839 = vmatprep.subr.mxu0 %v1211_v47 }
 0x630   :  { %v1001_v24 = vpop.xlane.xlu1 %1000  ;;  %2840 = vmatpush3.msra.mxu0 %v1211_v47 }
 0x631   :  { %v3448_v25 = vsub.f32 %v3422_v58, %v1008_v23  ;;  %v1007_v26 = vmul.f32 0.03125, %v1001_v24  ;;  %2841 = vmatprep.subr.mxu0 %v1210_v48 }
 0x632   :  { %2842 = vmatpush3.msra.mxu0 %v1210_v48 }
 0x633   :  { %v3451_v27 = vsub.f32 %v3425_v62, %v1007_v26  ;;  %v1016_v29 = vmul.f32 %v3448_v25, %v3448_v25  ;;  %2843 = vmatprep.subr.mxu0 %v1209_v49 }
 0x634   :  { %2844 = vmatpush3.msra.mxu0 %v1209_v49 }
 0x635   :  { %v1026_v30 = vsel %vm360_vm11, %v1016_v29, 0.0  ;;  %v1015_v31 = vmul.f32 %v3451_v27, %v3451_v27 }
 0x636   :  { %1027 = vadd.xlane.f32.xlu0 %v1026_v30 }
 0x637   :  { %v1023_v59 = vsel %vm360_vm11, %v1015_v31, 0.0 }
 0x638   :  { %1024 = vadd.xlane.f32.xlu1 %v1023_v59 }
 0x6bf   :  { %v1028_v50 = vpop.xlane.xlu0 %1027 }
 0x6c0   :  { %v1032_v51 = vmul.f32 0.03125, %v1028_v50 }
 0x6c1   :  { %v1025_v52 = vpop.xlane.xlu1 %1024 }
 0x6c2   :  { %v1036_v54 = vadd.f32 1e-05, %v1032_v51  ;;  %v1031_v55 = vmul.f32 0.03125, %v1025_v52 }
 0x6c4   :  { %2980 = vrsqrt.f32 %v1036_v54  ;;  %v1035_v56 = vadd.f32 1e-05, %v1031_v55  ;;  %v2533_v55 = vld [vmem:[%s3789_s18] ss:$0 sm:$0xff] }
 0x6c6   :  { %2982 = vrsqrt.f32 %v1035_v56 }
 0x6d1   :  { %v2981_v57 = vpop.eup %2980 }
 0x6d2   :  { %v1044_v60 = vmul.f32 %v2981_v57, %v3448_v25 }
 0x6d3   :  { %v2983_v0 = vpop.eup %2982 }
 0x6d4   :  { %v1043_v2 = vmul.f32 %v2983_v0, %v3451_v27  ;;  %v1054_v4 = vmul.f32 %v3434_v9, %v1044_v60 }
 0x6d5   :  { %v2809_v3 = vpop.f32.mrf.mxu0 }
 0x6d6   :  { %v1160_v5 = vadd.f32 %v2809_v3, %v2528_v1  ;;  %v1053_v45 = vmul.f32 %v3434_v9, %v1043_v2  ;;  %v1064_v14 = vadd.f32 %v3440_v16, %v1054_v4 }
 0x6d7   :  { %v1154_v7 = vpop.f32.mrf.mxu0 }
 0x6d8   :  { %v1174_v8 = vmul.f32 %v1160_v5, %v1160_v5  ;;  %v1155_v6 = vadd.f32 %v2528_v1, %v1154_v7  ;;  %v1063_v10 = vadd.f32 %v3440_v16, %v1053_v45 }
 0x6da   :  { %v1178_v15 = vmul.f32 %v1174_v8, %v1160_v5  ;;  %v1173_v17 = vmul.f32 %v1155_v6, %v1155_v6  ;;  %2810 = vmatprep.mubr.msk.f32.mxu0 %vm360_vm11, %v1063_v10 }
 0x6db   :  { %2811 = vmatmul.mubr.msk.f32.gmra.mxu0 %vm360_vm11, %v1064_v14 }
 0x6dc   :  { %v1182_v19 = vmul.f32 0.044715, %v1178_v15  ;;  %v1177_v20 = vmul.f32 %v1173_v17, %v1155_v6 }
 0x6de   :  { %v1186_v22 = vadd.f32 %v1182_v19, %v1160_v5  ;;  %v1181_v23 = vmul.f32 0.044715, %v1177_v20 }
 0x6e0   :  { %v1190_v24 = vmul.f32 0.7978846, %v1186_v22  ;;  %v1185_v25 = vadd.f32 %v1181_v23, %v1155_v6 }
 0x6e2   :  { %2984 = vtanh.f32 %v1190_v24  ;;  %v1189_v9 = vmul.f32 0.7978846, %v1185_v25 }
 0x6e4   :  { %2986 = vtanh.f32 %v1189_v9 }
 0x6ef   :  { %v2985_v26 = vpop.eup %2984 }
 0x6f0   :  { %v1198_v27 = vadd.f32 1.0, %v2985_v26 }
 0x6f1   :  { %v2987_v29 = vpop.eup %2986 }
 0x6f2   :  { %v1197_v30 = vadd.f32 1.0, %v2987_v29  ;;  %v1202_v16 = vmul.f32 0.5, %v1198_v27 }
 0x6f4   :  { %v1201_v31 = vmul.f32 0.5, %v1197_v30  ;;  %v1206_v33 = vmul.f32 %v1202_v16, %v1160_v5 }
 0x6f6   :  { %v1205_v59 = vmul.f32 %v1201_v31, %v1155_v6 }
 0x6f8   :  { %2845 = vmatprep.mubr.f32.mxu0 %v1205_v59 }
 0x6f9   :  { %2846 = vmatmul.mubr.f32.vlgmr.msra.gmra.mxu0 %v1206_v33 }
 0x79b   :  { %v2812_v34 = vpop.f32.mrf.mxu0 }
 0x79c   :  { %v1170_v21 = vadd.f32 %v2812_v34, %v2528_v1 }
 0x79d   :  { %v1164_v37 = vpop.f32.mrf.mxu0 }
 0x79e   :  { %v1176_v63 = vmul.f32 %v1170_v21, %v1170_v21  ;;  %v1165_v35 = vadd.f32 %v2528_v1, %v1164_v37 }
 0x7a0   :  { %v1180_v40 = vmul.f32 %v1176_v63, %v1170_v21  ;;  %v1175_v41 = vmul.f32 %v1165_v35, %v1165_v35  ;;  %v2537_v63 = vld [vmem:[%s3780_s9 + $0x1] ss:$0 sm:$0xff] }
 0x7a2   :  { %v1184_v42 = vmul.f32 0.044715, %v1180_v40  ;;  %v1179_v38 = vmul.f32 %v1175_v41, %v1165_v35 }
 0x7a4   :  { %v1188_v43 = vadd.f32 %v1184_v42, %v1170_v21  ;;  %v1183_v44 = vmul.f32 0.044715, %v1179_v38 }
 0x7a6   :  { %v1192_v46 = vmul.f32 0.7978846, %v1188_v43  ;;  %v1187_v47 = vadd.f32 %v1183_v44, %v1165_v35 }
 0x7a8   :  { %2988 = vtanh.f32 %v1192_v46  ;;  %v1191_v48 = vmul.f32 0.7978846, %v1187_v47 }
 0x7aa   :  { %2990 = vtanh.f32 %v1191_v48 }
 0x7b5   :  { %v2989_v49 = vpop.eup %2988 }
 0x7b6   :  { %v1200_v50 = vadd.f32 1.0, %v2989_v49 }
 0x7b7   :  { %v2991_v51 = vpop.eup %2990 }
 0x7b8   :  { %v1199_v52 = vadd.f32 1.0, %v2991_v51  ;;  %v1204_v56 = vmul.f32 0.5, %v1200_v50 }
 0x7b9   :  { %v2847_v54 = vpop.f32.mrf.mxu0 }
 0x7ba   :  { %v1311_v57 = vadd.f32 %v2847_v54, %v3394_v36  ;;  %v1203_v60 = vmul.f32 0.5, %v1199_v52  ;;  %v1208_v4 = vmul.f32 %v1204_v56, %v1170_v21 }
 0x7bb   :  { %v1291_v0 = vpop.f32.mrf.mxu0 }
 0x7bc   :  { %v3522_v1 = vadd.f32 %v2533_v55, %v1311_v57  ;;  %v1310_v2 = vadd.f32 %v1291_v0, %v3397_v39  ;;  %v1207_v3 = vmul.f32 %v1203_v60, %v1165_v35  ;;  %v2855_v0 = vpop.f32.mrf.mxu1 }
 0x7be   :  { %v3525_v5 = vadd.f32 %v2533_v55, %v1310_v2  ;;  %2848 = vmatprep.mubr.f32.mxu0 %v1207_v3  ;;  %v1332_v45 = vsel %vm360_vm11, %v3522_v1, 0.0  ;;  %v1472_v2 = vpop.f32.mrf.mxu1 }
 0x7bf   :  { %1333 = vadd.xlane.f32.xlu1 %v1332_v45  ;;  %2849 = vmatmul.mubr.f32.gmra.mxu0 %v1208_v4 }
 0x7c0   :  { %v1329_v7 = vsel %vm360_vm11, %v3525_v5, 0.0  ;;  %v2858_v3 = vpop.f32.mrf.mxu1 }
 0x7c1   :  { %1330 = vadd.xlane.f32.xlu0 %v1329_v7 }
 0x848   :  { %v1334_v36 = vpop.xlane.xlu1 %1333 }
 0x849   :  { %v1342_v8 = vmul.f32 0.03125, %v1334_v36  ;;  %v1482_v36 = vpop.f32.mrf.mxu1 }
 0x84a   :  { %v1331_v6 = vpop.xlane.xlu0 %1330 }
 0x84b   :  { %v1346_v10 = vsub.f32 %v3522_v1, %v1342_v8  ;;  %v1341_v39 = vmul.f32 0.03125, %v1331_v6 }
 0x84d   :  { %v1345_v14 = vsub.f32 %v3525_v5, %v1341_v39  ;;  %v1350_v15 = vmul.f32 %v1346_v10, %v1346_v10 }
 0x84f   :  { %v1356_v17 = vsel %vm360_vm11, %v1350_v15, 0.0  ;;  %v1349_v19 = vmul.f32 %v1345_v14, %v1345_v14 }
 0x850   :  { %1357 = vadd.xlane.f32.xlu1 %v1356_v17 }
 0x851   :  { %v1353_v20 = vsel %vm360_vm11, %v1349_v19, 0.0 }
 0x852   :  { %1354 = vadd.xlane.f32.xlu0 %v1353_v20 }
 0x87f   :  { %v2850_v22 = vpop.f32.mrf.mxu0 }
 0x880   :  { %v1313_v23 = vadd.f32 %v2850_v22, %v3422_v58 }
 0x881   :  { %v1301_v24 = vpop.f32.mrf.mxu0 }
 0x882   :  { %v3536_v25 = vadd.f32 %v2533_v55, %v1313_v23  ;;  %v1312_v9 = vadd.f32 %v1301_v24, %v3425_v62  ;;  %v2536_v62 = vld [vmem:[%s3779_s8 + $0x1] ss:$0 sm:$0xff] }
 0x884   :  { %v3539_v26 = vadd.f32 %v2533_v55, %v1312_v9  ;;  %v1338_v27 = vsel %vm360_vm11, %v3536_v25, 0.0 }
 0x885   :  { %1339 = vadd.xlane.f32.xlu1 %v1338_v27 }
 0x886   :  { %v1335_v29 = vsel %vm360_vm11, %v3539_v26, 0.0 }
 0x887   :  { %1336 = vadd.xlane.f32.xlu0 %v1335_v29  ;;  %v2552_v29 = vld [vmem:[%s3782_s11 + $0x20] sm:$0xff] }
 0x8d9   :  { %v1358_v30 = vpop.xlane.xlu1 %1357 }
 0x8da   :  { %v1366_v16 = vmul.f32 0.03125, %v1358_v30 }
 0x8db   :  { %v1355_v31 = vpop.xlane.xlu0 %1354 }
 0x8dc   :  { %v1370_v59 = vadd.f32 1e-05, %v1366_v16  ;;  %v1365_v58 = vmul.f32 0.03125, %v1355_v31  ;;  %v2561_v31 = vld [vmem:[%s3783_s12 + $0x1] ss:$0 sm:$0xff] }
 0x8de   :  { %2992 = vrsqrt.f32 %v1370_v59  ;;  %v1369_v33 = vadd.f32 1e-05, %v1365_v58 }
 0x8e0   :  { %2994 = vrsqrt.f32 %v1369_v33 }
 0x8eb   :  { %v2993_v34 = vpop.eup %2992 }
 0x8ec   :  { %v1378_v21 = vmul.f32 %v2993_v34, %v1346_v10 }
 0x8ed   :  { %v2995_v37 = vpop.eup %2994 }
 0x8ee   :  { %v1388_v35 = vmul.f32 %v2536_v62, %v1378_v21  ;;  %v1377_v40 = vmul.f32 %v2995_v37, %v1345_v14 }
 0x8f0   :  { %v1398_v41 = vadd.f32 %v2537_v63, %v1388_v35  ;;  %v1387_v42 = vmul.f32 %v2536_v62, %v1377_v40 }
 0x8f2   :  { %2859 = vmatprep.subr.mxu1 %v1398_v41  ;;  %v1397_v38 = vadd.f32 %v2537_v63, %v1387_v42 }
 0x8f3   :  { %2860 = vmatpush3.msra.mxu1 %v1398_v41 }
 0x8f4   :  { %2861 = vmatprep.subr.mxu1 %v1397_v38 }
 0x8f5   :  { %2862 = vmatpush3.msra.mxu1 %v1397_v38 }
 0x8f6   :  { %2864 = vmatmul.mubr.msk.f32.vlgmr.msra.gmra.mxu1 %vm538_vm15, %v3298_v32 }
 0x8f7   :  { %2870 = vmatprep.mubr.msk.f32.mxu1 %vm538_vm15, %v3318_v53 }
 0x90e   :  { %v1340_v43 = vpop.xlane.xlu1 %1339 }
 0x90f   :  { %v1344_v44 = vmul.f32 0.03125, %v1340_v43 }
 0x910   :  { %v1337_v46 = vpop.xlane.xlu0 %1336 }
 0x911   :  { %v1348_v47 = vsub.f32 %v3536_v25, %v1344_v44  ;;  %v1343_v48 = vmul.f32 0.03125, %v1337_v46 }
 0x913   :  { %v1347_v49 = vsub.f32 %v3539_v26, %v1343_v48  ;;  %v1352_v50 = vmul.f32 %v1348_v47, %v1348_v47 }
 0x915   :  { %v1362_v51 = vsel %vm360_vm11, %v1352_v50, 0.0  ;;  %v1351_v52 = vmul.f32 %v1347_v49, %v1347_v49 }
 0x916   :  { %1363 = vadd.xlane.f32.xlu1 %v1362_v51 }
 0x917   :  { %v1359_v54 = vsel %vm360_vm11, %v1351_v52, 0.0 }
 0x918   :  { %1360 = vadd.xlane.f32.xlu0 %v1359_v54  ;;  %v2568_v54 = vld [vmem:[%s3786_s15 + $0x30] sm:$0xff] }
 0x99f   :  { %v1364_v32 = vpop.xlane.xlu1 %1363 }
 0x9a0   :  { %v1368_v55 = vmul.f32 0.03125, %v1364_v32  ;;  %v2567_v32 = vld [vmem:[%s3786_s15 + $0x28] sm:$0xff] }
 0x9a1   :  { %v1361_v56 = vpop.xlane.xlu0 %1360 }
 0x9a2   :  { %v1372_v53 = vadd.f32 1e-05, %v1368_v55  ;;  %v1367_v57 = vmul.f32 0.03125, %v1361_v56  ;;  %v2566_v55 = vld [vmem:[%s3786_s15 + $0x20] sm:$0xff]  ;;  %v3048_v56 = vld [vmem:[%s3777_s6 + $0x8] sm:$0x7] }
 0x9a4   :  { %2996 = vrsqrt.f32 %v1372_v53  ;;  %v1371_v60 = vadd.f32 1e-05, %v1367_v57 }
 0x9a6   :  { %2998 = vrsqrt.f32 %v1371_v60 }
 0x9b1   :  { %v2997_v4 = vpop.eup %2996 }
 0x9b2   :  { %v1380_v7 = vmul.f32 %v2997_v4, %v1348_v47 }
 0x9b3   :  { %v2999_v45 = vpop.eup %2998 }
 0x9b4   :  { %v1379_v8 = vmul.f32 %v2999_v45, %v1347_v49  ;;  %v1390_v39 = vmul.f32 %v2536_v62, %v1380_v7 }
 0x9b6   :  { %v2865_v6 = vpop.f32.mrf.mxu1  ;;  %v1389_v17 = vmul.f32 %v2536_v62, %v1379_v8  ;;  %v1400_v19 = vadd.f32 %v2537_v63, %v1390_v39 }
 0x9b7   :  { %v1567_v10 = vmul.f32 %v2865_v6, %v2855_v0 }
 0x9b8   :  { %v1557_v14 = vpop.f32.mrf.mxu1  ;;  %v1399_v20 = vadd.f32 %v2537_v63, %v1389_v17 }
 0x9b9   :  { %v1566_v15 = vmul.f32 %v1557_v14, %v1472_v2  ;;  %2866 = vmatprep.subr.mxu1 %v1567_v10 }
 0x9ba   :  { %2867 = vmatpush3.msra.mxu1 %v1567_v10 }
 0x9bb   :  { %2868 = vmatprep.subr.mxu1 %v1566_v15 }
 0x9bc   :  { %2869 = vmatpush3.msra.mxu1 %v1566_v15 }
 0x9bd   :  { %2871 = vmatmul.mubr.msk.f32.vlgmr.msra.gmra.mxu1 %vm538_vm15, %v3342_v12  ;;  %2873 = vmatprep.subr.mxu1 %v1400_v19 }
 0x9be   :  { %2874 = vmatpush3.msra.mxu1 %v1400_v19  ;;  %2877 = vmatprep.mubr.msk.f32.mxu1 %vm538_vm15, %v3327_v61  ;;  %v2555_v61 = vld [vmem:[%s3782_s11 + $0x38] sm:$0xff] }
 0x9bf   :  { %2875 = vmatprep.subr.mxu1 %v1399_v20 }
 0x9c0   :  { %2876 = vmatpush3.msra.mxu1 %v1399_v20  ;;  %v3643_v20 = vld [vmem:[%s3784_s13 + $0x1] ss:$0 sm:$0xff] }
 0x9c1   :  { %2878 = vmatmul.mubr.msk.f32.vlgmr.msra.gmra.mxu1 %vm538_vm15, %v3337_v11  ;;  %v2554_v11 = vld [vmem:[%s3782_s11 + $0x30] sm:$0xff] }
 0x9c2   :  { %2884 = vmatprep.mubr.msk.f32.mxu1 %vm538_vm15, %v3363_v18  ;;  %v2553_v18 = vld [vmem:[%s3782_s11 + $0x28] sm:$0xff] }
 0xa7d   :  { %v2872_v22 = vpop.f32.mrf.mxu1 }
 0xa7f   :  { %v1634_v23 = vpop.f32.mrf.mxu1 }
 0xa81   :  { %v2879_v24 = vpop.f32.mrf.mxu1 }
 0xa82   :  { %v1719_v9 = vmul.f32 %v2879_v24, %v2858_v3 }
 0xa83   :  { %v1709_v27 = vpop.f32.mrf.mxu1 }
 0xa84   :  { %v1718_v12 = vmul.f32 %v1709_v27, %v1482_v36  ;;  %2880 = vmatprep.subr.mxu1 %v1719_v9 }
 0xa85   :  { %2881 = vmatpush3.msra.mxu1 %v1719_v9  ;;  %v3649_v9 = vld [vmem:[%s3804_s14 + $0x1] ss:$0 sm:$0xff] }
 0xa86   :  { %2882 = vmatprep.subr.mxu1 %v1718_v12 }
 0xa87   :  { %2883 = vmatpush3.msra.mxu1 %v1718_v12 }
 0xa88   :  { %2885 = vmatmul.mubr.msk.f32.vlgmr.msra.gmra.mxu1 %vm538_vm15, %v3371_v28  ;;  %2887 = vmatprep.subr.mxu1 %v2555_v61 }
 0xa89   :  { %2888 = vmatpush3.msra.mxu1 %v2555_v61  ;;  %2895 = vmatprep.mubr.msk.f32.mxu1 %vm360_vm11, %v1634_v23 }
 0xa8a   :  { %2889 = vmatprep.subr.mxu1 %v2554_v11 }
 0xa8b   :  { %2890 = vmatpush3.msra.mxu1 %v2554_v11  ;;  %v3049_v11 = vld [vmem:[%s3777_s6] sm:$0xff] }
 0xa8c   :  { %2891 = vmatprep.subr.mxu1 %v2553_v18 }
 0xa8d   :  { %2892 = vmatpush3.msra.mxu1 %v2553_v18  ;;  %v2591_v18 = vld [vmem:[%s3788_s17 + $0xf8] sm:$0xff] }
 0xa8e   :  { %2893 = vmatprep.subr.mxu1 %v2552_v29 }
 0xa8f   :  { %2894 = vmatpush3.msra.mxu1 %v2552_v29  ;;  %v2590_v29 = vld [vmem:[%s3788_s17 + $0xf0] sm:$0xff] }
 0xa90   :  { %2896 = vmatmul.mubr.msk.f32.vlgmr.msra.gmra.mxu1 %vm360_vm11, %v2872_v22  ;;  %2915 = vmatprep.subr.mxu1 %v2591_v18 }
 0xa91   :  { %2916 = vmatpush3.msra.mxu1 %v2591_v18 }
 0xa92   :  { %2917 = vmatprep.subr.mxu1 %v2590_v29 }
 0xa93   :  { %2918 = vmatpush3.msra.mxu1 %v2590_v29 }
 0xb48   :  { %v2886_v28 = vpop.f32.mrf.mxu1 }
 0xb4a   :  { %v1786_v30 = vpop.f32.mrf.mxu1 }
 0xb4b   :  { %2898 = vmatprep.mubr.msk.f32.mxu1 %vm360_vm11, %v1786_v30  ;;  %v2588_v30 = vld [vmem:[%s3788_s17 + $0xe0] sm:$0xff] }
 0xb4c   :  { %2899 = vmatmul.mubr.msk.f32.gmra.mxu1 %vm360_vm11, %v2886_v28  ;;  %v2589_v28 = vld [vmem:[%s3788_s17 + $0xe8] sm:$0xff] }
 0xb4d   :  { %2919 = vmatprep.subr.mxu1 %v2589_v28 }
 0xb4e   :  { %2920 = vmatpush3.msra.mxu1 %v2589_v28 }
 0xb4f   :  { %2921 = vmatprep.subr.mxu1 %v2588_v30 }
 0xb50   :  { %v2897_v16 = vpop.f32.mrf.mxu1  ;;  %2922 = vmatpush3.msra.mxu1 %v2588_v30 }
 0xb51   :  { %v1898_v59 = vadd.f32 %v2897_v16, %v3522_v1  ;;  %v2587_v16 = vld [vmem:[%s3788_s17 + $0xd8] sm:$0xff] }
 0xb52   :  { %v1878_v58 = vpop.f32.mrf.mxu1  ;;  %2923 = vmatprep.subr.mxu1 %v2587_v16 }
 0xb53   :  { %v3589_v33 = vadd.f32 %v2561_v31, %v1898_v59  ;;  %v1897_v34 = vadd.f32 %v1878_v58, %v3525_v5  ;;  %2924 = vmatpush3.msra.mxu1 %v2587_v16  ;;  %v2585_v59 = vld [vmem:[%s3788_s17 + $0xc8] sm:$0xff]  ;;  %v2584_v58 = vld [vmem:[%s3788_s17 + $0xc0] sm:$0xff] }
 0xb55   :  { %v3592_v62 = vadd.f32 %v2561_v31, %v1897_v34  ;;  %v1920_v21 = vsel %vm360_vm11, %v3589_v33, 0.0  ;;  %v2583_v34 = vld [vmem:[%s3788_s17 + $0xb8] sm:$0xff] }
 0xb56   :  { %1921 = vadd.xlane.f32.xlu0 %v1920_v21  ;;  %v2582_v21 = vld [vmem:[%s3788_s17 + $0xb0] sm:$0xff] }
 0xb57   :  { %v1917_v37 = vsel %vm360_vm11, %v3592_v62, 0.0 }
 0xb58   :  { %1918 = vadd.xlane.f32.xlu1 %v1917_v37  ;;  %v2581_v37 = vld [vmem:[%s3788_s17 + $0xa8] sm:$0xff] }
 0xbdf   :  { %v1922_v63 = vpop.xlane.xlu0 %1921 }
 0xbe0   :  { %v1930_v40 = vmul.f32 0.03125, %v1922_v63  ;;  %v2580_v63 = vld [vmem:[%s3788_s17 + $0xa0] sm:$0xff] }
 0xbe1   :  { %v1919_v35 = vpop.xlane.xlu1 %1918 }
 0xbe2   :  { %v1929_v41 = vmul.f32 0.03125, %v1919_v35  ;;  %v1934_v42 = vsub.f32 %v3589_v33, %v1930_v40  ;;  %v2579_v35 = vld [vmem:[%s3788_s17 + $0x98] sm:$0xff]  ;;  %v2578_v40 = vld [vmem:[%s3788_s17 + $0x90] sm:$0xff] }
 0xbe4   :  { %v1933_v43 = vsub.f32 %v3592_v62, %v1929_v41  ;;  %v1938_v49 = vmul.f32 %v1934_v42, %v1934_v42  ;;  %v2577_v41 = vld [vmem:[%s3788_s17 + $0x88] sm:$0xff] }
 0xbe6   :  { %v1937_v51 = vmul.f32 %v1933_v43, %v1933_v43 }
 0xbe8   :  { %v1941_v52 = vsel %vm360_vm11, %v1937_v51, 0.0 }
 0xc0c   :  { %v2900_v1 = vpop.f32.mrf.mxu1 }
 0xc0d   :  { %v1900_v38 = vadd.f32 %v2900_v1, %v3536_v25  ;;  %v1944_v25 = vsel %vm360_vm11, %v1938_v49, 0.0  ;;  %v2576_v1 = vld [vmem:[%s3788_s17 + $0x80] sm:$0xff] }
 0xc0e   :  { %v1888_v5 = vpop.f32.mrf.mxu1 }
 0xc0f   :  { %v3601_v44 = vadd.f32 %v2561_v31, %v1900_v38  ;;  %v1899_v46 = vadd.f32 %v1888_v5, %v3539_v26  ;;  %v2569_v26 = vld [vmem:[%s3786_s15 + $0x38] sm:$0xff] }
 0xc10   :  { %2901 = vmatprep.subr.mxu0 %v2569_v26 }
 0xc11   :  { %v3604_v47 = vadd.f32 %v2561_v31, %v1899_v46  ;;  %v1926_v48 = vsel %vm360_vm11, %v3601_v44, 0.0  ;;  %2902 = vmatpush3.msra.mxu0 %v2569_v26  ;;  %v2586_v31 = vld [vmem:[%s3788_s17 + $0xd0] sm:$0xff] }
 0xc12   :  { %1927 = vadd.xlane.f32.xlu0 %v1926_v48  ;;  %2903 = vmatprep.subr.mxu0 %v2568_v54 }
 0xc13   :  { %v1923_v50 = vsel %vm360_vm11, %v3604_v47, 0.0  ;;  %2904 = vmatpush3.msra.mxu0 %v2568_v54  ;;  %2925 = vmatprep.subr.mxu1 %v2586_v31 }
 0xc14   :  { %1924 = vadd.xlane.f32.xlu1 %v1923_v50  ;;  %2905 = vmatprep.subr.mxu0 %v2567_v32 }
 0xc15   :  { %2906 = vmatpush3.msra.mxu0 %v2567_v32  ;;  %2926 = vmatpush3.msra.mxu1 %v2586_v31 }
 0xc16   :  { %1945 = vadd.xlane.f32.xlu0 %v1944_v25  ;;  %2907 = vmatprep.subr.mxu0 %v2566_v55 }
 0xc17   :  { %2908 = vmatpush3.msra.mxu0 %v2566_v55  ;;  %2927 = vmatprep.subr.mxu1 %v2585_v59  ;;  %v2571_v55 = vld [vmem:[%s3787_s16 + $0x1] ss:$0 sm:$0xff] }
 0xc18   :  { %1942 = vadd.xlane.f32.xlu1 %v1941_v52  ;;  %2953 = vmatprep.subr.msk.mxu0 %vm360_vm11, %v3048_v56 }
 0xc19   :  { %2928 = vmatpush3.msra.mxu1 %v2585_v59 }
 0xc1a   :  { %2929 = vmatprep.subr.mxu1 %v2584_v58 }
 0xc1b   :  { %2930 = vmatpush3.msra.mxu1 %v2584_v58 }
 0xc1c   :  { %2931 = vmatprep.subr.mxu1 %v2583_v34 }
 0xc1d   :  { %2932 = vmatpush3.msra.mxu1 %v2583_v34 }
 0xc1e   :  { %2933 = vmatprep.subr.mxu1 %v2582_v21 }
 0xc1f   :  { %2934 = vmatpush3.msra.mxu1 %v2582_v21 }
 0xc20   :  { %2935 = vmatprep.subr.mxu1 %v2581_v37 }
 0xc21   :  { %2936 = vmatpush3.msra.mxu1 %v2581_v37 }
 0xc22   :  { %2937 = vmatprep.subr.mxu1 %v2580_v63 }
 0xc23   :  { %2938 = vmatpush3.msra.mxu1 %v2580_v63 }
 0xc24   :  { %2939 = vmatprep.subr.mxu1 %v2579_v35 }
 0xc25   :  { %2940 = vmatpush3.msra.mxu1 %v2579_v35 }
 0xc26   :  { %2941 = vmatprep.subr.mxu1 %v2578_v40 }
 0xc27   :  { %2942 = vmatpush3.msra.mxu1 %v2578_v40 }
 0xc28   :  { %2943 = vmatprep.subr.mxu1 %v2577_v41 }
 0xc29   :  { %2944 = vmatpush3.msra.mxu1 %v2577_v41 }
 0xc2a   :  { %2945 = vmatprep.subr.mxu1 %v2576_v1 }
 0xc2b   :  { %2946 = vmatpush3.msra.mxu1 %v2576_v1 }
 0xc9b   :  { %v1928_v53 = vpop.xlane.xlu0 %1927 }
 0xc9c   :  { %v1932_v57 = vmul.f32 0.03125, %v1928_v53 }
 0xc9d   :  { %v1925_v60 = vpop.xlane.xlu1 %1924 }
 0xc9e   :  { %v3629_v0 = vsub.f32 %v3601_v44, %v1932_v57  ;;  %v1931_v2 = vmul.f32 0.03125, %v1925_v60 }
 0xc9f   :  { %v1946_v3 = vpop.xlane.xlu0 %1945 }
 0xca0   :  { %v3632_v4 = vsub.f32 %v3604_v47, %v1931_v2  ;;  %v1954_v45 = vmul.f32 0.03125, %v1946_v3  ;;  %v1940_v7 = vmul.f32 %v3629_v0, %v3629_v0 }
 0xca1   :  { %v1943_v36 = vpop.xlane.xlu1 %1942 }
 0xca2   :  { %v1958_v8 = vadd.f32 1e-05, %v1954_v45  ;;  %v1953_v6 = vmul.f32 0.03125, %v1943_v36  ;;  %v1950_v10 = vsel %vm360_vm11, %v1940_v7, 0.0  ;;  %v1939_v39 = vmul.f32 %v3632_v4, %v3632_v4 }
 0xca3   :  { %1951 = vadd.xlane.f32.xlu0 %v1950_v10 }
 0xca4   :  { %3000 = vrsqrt.f32 %v1958_v8  ;;  %v1957_v14 = vadd.f32 1e-05, %v1953_v6  ;;  %v1947_v15 = vsel %vm360_vm11, %v1939_v39, 0.0 }
 0xca5   :  { %1948 = vadd.xlane.f32.xlu1 %v1947_v15 }
 0xca6   :  { %3002 = vrsqrt.f32 %v1957_v14 }
 0xcb1   :  { %v3001_v17 = vpop.eup %3000 }
 0xcb2   :  { %v1966_v19 = vmul.f32 %v3001_v17, %v1934_v42 }
 0xcb3   :  { %v3003_v22 = vpop.eup %3002 }
 0xcb4   :  { %v1965_v23 = vmul.f32 %v3003_v22, %v1933_v43  ;;  %v1976_v24 = vmul.f32 %v3643_v20, %v1966_v19 }
 0xcb6   :  { %v1975_v27 = vmul.f32 %v3643_v20, %v1965_v23  ;;  %v1986_v61 = vadd.f32 %v3649_v9, %v1976_v24 }
 0xcb8   :  { %v1985_v12 = vadd.f32 %v3649_v9, %v1975_v27 }
 0xcba   :  { %2909 = vmatprep.mubr.msk.f32.mxu0 %vm360_vm11, %v1985_v12 }
 0xcbb   :  { %2910 = vmatmul.mubr.msk.f32.vlgmr.msra.gmra.mxu0 %vm360_vm11, %v1986_v61 }
 0xcbc   :  { %2954 = vmatpush3.xpose.msk.msra.mxu0 %vm360_vm11, %v3048_v56 }
 0xcbd   :  { %2955 = vmatprep.subr.msk.mxu0 %vm360_vm11, %v3049_v11 }
 0xcc0   :  { %2956 = vmatpush3.xpose.msk.msra.mxu0 %vm360_vm11, %v3049_v11 }
 0xd2c   :  { %v1952_v42 = vpop.xlane.xlu0 %1951 }
 0xd2d   :  { %v1956_v38 = vmul.f32 0.03125, %v1952_v42 }
 0xd2e   :  { %v1949_v5 = vpop.xlane.xlu1 %1948 }
 0xd2f   :  { %v1960_v43 = vadd.f32 1e-05, %v1956_v38  ;;  %v1955_v46 = vmul.f32 0.03125, %v1949_v5 }
 0xd31   :  { %3004 = vrsqrt.f32 %v1960_v43  ;;  %v1959_v48 = vadd.f32 1e-05, %v1955_v46  ;;  %v2593_v43 = vld [vmem:[%s3789_s18 + $0x1] ss:$0 sm:$0xff] }
 0xd33   :  { %3006 = vrsqrt.f32 %v1959_v48 }
 0xd3e   :  { %v3005_v49 = vpop.eup %3004 }
 0xd3f   :  { %v1968_v50 = vmul.f32 %v3005_v49, %v3629_v0 }
 0xd40   :  { %v3007_v51 = vpop.eup %3006 }
 0xd41   :  { %v1967_v25 = vmul.f32 %v3007_v51, %v3632_v4  ;;  %v1978_v52 = vmul.f32 %v3643_v20, %v1968_v50 }
 0xd43   :  { %v1977_v26 = vmul.f32 %v3643_v20, %v1967_v25  ;;  %v1988_v32 = vadd.f32 %v3649_v9, %v1978_v52 }
 0xd45   :  { %v1987_v54 = vadd.f32 %v3649_v9, %v1977_v26 }
 0xd47   :  { %2912 = vmatprep.mubr.msk.f32.mxu0 %vm360_vm11, %v1987_v54 }
 0xd48   :  { %2913 = vmatmul.mubr.msk.f32.gmra.mxu0 %vm360_vm11, %v1988_v32 }
 0xd7b   :  { %v2911_v56 = vpop.f32.mrf.mxu0 }
 0xd7c   :  { %v2086_v53 = vadd.f32 %v2911_v56, %v2571_v55 }
 0xd7d   :  { %v2080_v57 = vpop.f32.mrf.mxu0 }
 0xd7e   :  { %v2100_v60 = vmul.f32 %v2086_v53, %v2086_v53  ;;  %v2081_v0 = vadd.f32 %v2571_v55, %v2080_v57 }
 0xd80   :  { %v2104_v2 = vmul.f32 %v2100_v60, %v2086_v53  ;;  %v2099_v3 = vmul.f32 %v2081_v0, %v2081_v0  ;;  %v2401_v60 = vld [vmem:[%s3805_s27 + $0x10] sm:$0xff] }
 0xd82   :  { %v2108_v4 = vmul.f32 0.044715, %v2104_v2  ;;  %v2103_v45 = vmul.f32 %v2099_v3, %v2081_v0  ;;  %v2402_v2 = vld [vmem:[%s3805_s27 + $0x18] sm:$0xff] }
 0xd84   :  { %v2112_v7 = vadd.f32 %v2108_v4, %v2086_v53  ;;  %v2107_v36 = vmul.f32 0.044715, %v2103_v45 }
 0xd86   :  { %v2116_v8 = vmul.f32 0.7978846, %v2112_v7  ;;  %v2111_v6 = vadd.f32 %v2107_v36, %v2081_v0 }
 0xd88   :  { %3008 = vtanh.f32 %v2116_v8  ;;  %v2115_v10 = vmul.f32 0.7978846, %v2111_v6 }
 0xd8a   :  { %3010 = vtanh.f32 %v2115_v10 }
 0xd95   :  { %v3009_v39 = vpop.eup %3008 }
 0xd96   :  { %v2124_v14 = vadd.f32 1.0, %v3009_v39 }
 0xd97   :  { %v3011_v15 = vpop.eup %3010 }
 0xd98   :  { %v2123_v17 = vadd.f32 1.0, %v3011_v15  ;;  %v2128_v19 = vmul.f32 0.5, %v2124_v14 }
 0xd9a   :  { %v2127_v20 = vmul.f32 0.5, %v2123_v17  ;;  %v2132_v23 = vmul.f32 %v2128_v19, %v2086_v53 }
 0xd9c   :  { %v2131_v22 = vmul.f32 %v2127_v20, %v2081_v0  ;;  %v2400_v0 = vld [vmem:[%s3805_s27 + $0x8] sm:$0xff] }
 0xd9e   :  { %2947 = vmatprep.mubr.f32.mxu1 %v2131_v22 }
 0xd9f   :  { %2948 = vmatmul.mubr.f32.vlgmr.msra.gmra.mxu1 %v2132_v23 }
 0xe08   :  { %v2914_v24 = vpop.f32.mrf.mxu0 }
 0xe09   :  { %v2096_v9 = vadd.f32 %v2914_v24, %v2571_v55 }
 0xe0a   :  { %v2090_v27 = vpop.f32.mrf.mxu0 }
 0xe0b   :  { %v2102_v12 = vmul.f32 %v2096_v9, %v2096_v9  ;;  %v2091_v61 = vadd.f32 %v2571_v55, %v2090_v27 }
 0xe0d   :  { %v2106_v11 = vmul.f32 %v2102_v12, %v2096_v9  ;;  %v2101_v18 = vmul.f32 %v2091_v61, %v2091_v61 }
 0xe0f   :  { %v2110_v29 = vmul.f32 0.044715, %v2106_v11  ;;  %v2105_v28 = vmul.f32 %v2101_v18, %v2091_v61 }
 0xe11   :  { %v2114_v30 = vadd.f32 %v2110_v29, %v2096_v9  ;;  %v2109_v16 = vmul.f32 0.044715, %v2105_v28 }
 0xe13   :  { %v2118_v31 = vmul.f32 0.7978846, %v2114_v30  ;;  %v2113_v59 = vadd.f32 %v2109_v16, %v2091_v61 }
 0xe15   :  { %3012 = vtanh.f32 %v2118_v31  ;;  %v2117_v58 = vmul.f32 0.7978846, %v2113_v59 }
 0xe17   :  { %3014 = vtanh.f32 %v2117_v58 }
 0xe22   :  { %v3013_v34 = vpop.eup %3012 }
 0xe23   :  { %v2126_v21 = vadd.f32 1.0, %v3013_v34 }
 0xe24   :  { %v3015_v37 = vpop.eup %3014 }
 0xe25   :  { %v2125_v63 = vadd.f32 1.0, %v3015_v37  ;;  %v2130_v35 = vmul.f32 0.5, %v2126_v21 }
 0xe27   :  { %v2129_v40 = vmul.f32 0.5, %v2125_v63  ;;  %v2134_v1 = vmul.f32 %v2130_v35, %v2096_v9 }
 0xe29   :  { %v2133_v41 = vmul.f32 %v2129_v40, %v2091_v61 }
 0xe2b   :  { %2950 = vmatprep.mubr.f32.mxu1 %v2133_v41 }
 0xe2c   :  { %2951 = vmatmul.mubr.f32.gmra.mxu1 %v2134_v1 }
 0xe5f   :  { %v2949_v42 = vpop.f32.mrf.mxu1 }
 0xe60   :  { %v2238_v38 = vadd.f32 %v2949_v42, %v3589_v33 }
 0xe61   :  { %v2218_v5 = vpop.f32.mrf.mxu1 }
 0xe62   :  { %v2237_v46 = vadd.f32 %v2218_v5, %v3592_v62  ;;  %v2250_v49 = vadd.f32 %v2593_v43, %v2238_v38 }
 0xe64   :  { %v2249_v48 = vadd.f32 %v2593_v43, %v2237_v46 }
 0xe66   :  { %2957 = vmatprep.mubr.msk.f32.mxu0 %vm360_vm11, %v2249_v48 }
 0xe67   :  { %2958 = vmatmul.mubr.msk.f32.vlgmr.msra.gmra.mxu0 %vm360_vm11, %v2250_v49 }
 0xeec   :  { %v2952_v50 = vpop.f32.mrf.mxu1 }
 0xeed   :  { %v2240_v51 = vadd.f32 %v2952_v50, %v3601_v44  ;;  %v2399_v44 = vld [vmem:[%s3805_s27] sm:$0xff] }
 0xeee   :  { %v2228_v25 = vpop.f32.mrf.mxu1 }
 0xeef   :  { %v2239_v52 = vadd.f32 %v2228_v25, %v3604_v47  ;;  %v2252_v26 = vadd.f32 %v2593_v43, %v2240_v51 }
 0xef1   :  { %v2251_v33 = vadd.f32 %v2593_v43, %v2239_v52 }
 0xef3   :  { %2960 = vmatprep.mubr.msk.f32.mxu0 %vm360_vm11, %v2251_v33 }
 0xef4   :  { %2961 = vmatmul.mubr.msk.f32.gmra.mxu0 %vm360_vm11, %v2252_v26 }
 0xf27   :  { %v2959_v54 = vpop.f32.mrf.mxu0 }
 0xf28   :  { %v2358_v62 = vsel %vm218_vm2, %v2959_v54, -inf }
 0xf29   :  { %2359 = vmax.xlane.f32.xlu0 %v2358_v62  ;;  %v2336_v32 = vpop.f32.mrf.mxu0 }
 0xf2a   :  { %v2355_v55 = vsel %vm218_vm2, %v2336_v32, -inf }
 0xf2b   :  { %2356 = vmax.xlane.f32.xlu1 %v2355_v55 }
 0xf3c   :  { %2404 = vperm.xlu1 %2967, %v2399_v44  }
 0xfb2   :  { %v3748_v45 = vpop.xlane.xlu0 %2359 }
 0xfb3   :  { %v2368_v36 = vsub.f32 %v2959_v54, %v3748_v45 }
 0xfb4   :  { %v2962_v47 = vpop.f32.mrf.mxu0  ;;  %v2357_v3 = vpop.xlane.xlu1 %2356 }
 0xfb5   :  { %v2364_v56 = vsel %vm218_vm2, %v2962_v47, -inf  ;;  %v2367_v4 = vsub.f32 %v2336_v32, %v2357_v3  ;;  %v2373_v8 = vmul.f32 1.442695, %v2368_v36 }
 0xfb6   :  { %2365 = vmax.xlane.f32.xlu0 %v2364_v56  ;;  %v2346_v53 = vpop.f32.mrf.mxu0 }
 0xfb7   :  { %v2361_v57 = vsel %vm218_vm2, %v2346_v53, -inf  ;;  %v2371_v7 = vmul.f32 1.442695, %v2367_v4 }
 0xfb8   :  { %2362 = vmax.xlane.f32.xlu1 %v2361_v57  ;;  %v2405_v39 = vpop.permute.xlu1 %2404 }
 0xfb9   :  { %3016 = vpow2.f32 %v2371_v7  ;;  %vm2415_vm0 = vcmp.eq.s32.totalorder %v3210_v13, %v2405_v39 }
 0xfba   :  { %3018 = vpow2.f32 %v2373_v8  ;;  %v2419_v17 = vsel %vm2415_vm0, %v2336_v32, 0.0 }
 0xfbb   :  { %v2423_v19 = vsel %vm218_vm2, %v2419_v17, 0.0 }
 0xfc6   :  { %v3017_v6 = vpop.eup %3016 }
 0xfc7   :  { %v2379_v10 = vsel %vm218_vm2, %v3017_v6, 0.0  ;;  %v3019_v14 = vpop.eup %3018 }
 0xfc8   :  { %v2382_v15 = vsel %vm218_vm2, %v3019_v14, 0.0 }
 0xfc9   :  { %2410 = vperm.xlu1 %2967, %v2401_v60  }
 0xfcc   :  { %2407 = vperm.xlu0 %2966, %v2400_v0  }
 0xfcd   :  { %2413 = vperm.xlu1 %2967, %v2402_v2  }
 0xfeb   :  { %2380 = vadd.xlane.f32.xlu0 %v2379_v10 }
 0xff1   :  { %2383 = vadd.xlane.f32.xlu1 %v2382_v15 }
 0xff5   :  { %2424 = vadd.xlane.f32.xlu1 %v2423_v19 }
0x103f   :  { %v3755_v20 = vpop.xlane.xlu0 %2365 }
0x1040   :  { %v2370_v22 = vsub.f32 %v2962_v47, %v3755_v20 }
0x1041   :  { %v2363_v23 = vpop.xlane.xlu1 %2362 }
0x1042   :  { %v2369_v24 = vsub.f32 %v2346_v53, %v2363_v23  ;;  %v2377_v9 = vmul.f32 1.442695, %v2370_v22 }
0x1044   :  { %v2375_v27 = vmul.f32 1.442695, %v2369_v24 }
0x1045   :  { %v2411_v12 = vpop.permute.xlu1 %2410 }
0x1046   :  { %3020 = vpow2.f32 %v2375_v27  ;;  %vm2417_vm1 = vcmp.eq.s32.totalorder %v3210_v13, %v2411_v12 }
0x1047   :  { %v2421_v61 = vsel %vm2417_vm1, %v2346_v53, 0.0  ;;  %3022 = vpow2.f32 %v2377_v9  ;;  %v2408_v29 = vpop.permute.xlu0 %2407 }
0x1048   :  { %v2429_v11 = vsel %vm218_vm2, %v2421_v61, 0.0  ;;  %vm2416_vm3 = vcmp.eq.s32.totalorder %v3210_v13, %v2408_v29 }
0x1049   :  { %2430 = vadd.xlane.f32.xlu1 %v2429_v11  ;;  %v2414_v16 = vpop.permute.xlu1 %2413  ;;  %v2420_v59 = vsel %vm2416_vm3, %v2959_v54, 0.0 }
0x104a   :  { %vm2418_vm4 = vcmp.eq.s32.totalorder %v3210_v13, %v2414_v16  ;;  %v2426_v58 = vsel %vm218_vm2, %v2420_v59, 0.0 }
0x104b   :  { %v2422_v34 = vsel %vm2418_vm4, %v2962_v47, 0.0 }
0x104c   :  { %v2432_v21 = vsel %vm218_vm2, %v2422_v34, 0.0 }
0x1053   :  { %v3021_v18 = vpop.eup %3020 }
0x1054   :  { %v2385_v28 = vsel %vm218_vm2, %v3021_v18, 0.0  ;;  %v3023_v30 = vpop.eup %3022 }
0x1055   :  { %2386 = vadd.xlane.f32.xlu0 %v2385_v28  ;;  %v2388_v31 = vsel %vm218_vm2, %v3023_v30, 0.0  ;;  %vm2477_vm2 = vcmask 0  }
0x1059   :  { %2389 = vadd.xlane.f32.xlu0 %v2388_v31 }
0x105d   :  { %2427 = vadd.xlane.f32.xlu0 %v2426_v58 }
0x1061   :  { %2433 = vadd.xlane.f32.xlu0 %v2432_v21 }
0x1074   :  { %v2381_v37 = vpop.xlane.xlu0 %2380 }
0x1075   :  { %3024 = vlog2.f32 %v2381_v37 }
0x107a   :  { %v2384_v63 = vpop.xlane.xlu1 %2383 }
0x107b   :  { %3026 = vlog2.f32 %v2384_v63 }
0x107e   :  { %v2425_v40 = vpop.xlane.xlu1 %2424 }
0x107f   :  { %v2435_v42 = vsub.f32 %v2425_v40, %v2357_v3 }
0x1082   :  { %v3025_v35 = vpop.eup %3024 }
0x1083   :  { %v2392_v1 = vmul.f32 0.6931472, %v3025_v35 }
0x1085   :  { %v2439_v5 = vsub.f32 %v2435_v42, %v2392_v1 }
0x1087   :  { %v2443_v48 = vmul.f32 1.442695, %v2439_v5 }
0x1088   :  { %v3027_v13 = vpop.eup %3026 }
0x1089   :  { %v2394_v46 = vmul.f32 0.6931472, %v3027_v13 }
0x10d2   :  { %v2431_v51 = vpop.xlane.xlu1 %2430 }
0x10d3   :  { %v2437_v33 = vsub.f32 %v2431_v51, %v2363_v23 }
0x10de   :  { %v2387_v41 = vpop.xlane.xlu0 %2386 }
0x10df   :  { %3028 = vlog2.f32 %v2387_v41 }
0x10e2   :  { %v2390_v38 = vpop.xlane.xlu0 %2389 }
0x10e3   :  { %3030 = vlog2.f32 %v2390_v38 }
0x10e4   :  { %3032 = vpow2.f32 %v2443_v48 }
0x10e6   :  { %v2428_v43 = vpop.xlane.xlu0 %2427 }
0x10e7   :  { %v2436_v49 = vsub.f32 %v2428_v43, %v3748_v45 }
0x10e9   :  { %v2440_v50 = vsub.f32 %v2436_v49, %v2394_v46 }
0x10ea   :  { %v2434_v54 = vpop.xlane.xlu0 %2433 }
0x10eb   :  { %v2445_v25 = vmul.f32 1.442695, %v2440_v50  ;;  %v2438_v47 = vsub.f32 %v2434_v54, %v3755_v20 }
0x10ec   :  { %v3029_v52 = vpop.eup %3028 }
0x10ed   :  { %v2396_v26 = vmul.f32 0.6931472, %v3029_v52  ;;  %3034 = vpow2.f32 %v2445_v25 }
0x10ef   :  { %v2441_v62 = vsub.f32 %v2437_v33, %v2396_v26 }
0x10f0   :  { %v3031_v32 = vpop.eup %3030 }
0x10f1   :  { %v2447_v55 = vmul.f32 1.442695, %v2441_v62  ;;  %v2398_v44 = vmul.f32 0.6931472, %v3031_v32  ;;  %v3033_v57 = vpop.eup %3032 }
0x10f2   :  { %v2451_v0 = vadd.f32 1e-06, %v3033_v57 }
0x10f3   :  { %3036 = vpow2.f32 %v2447_v55  ;;  %v2442_v56 = vsub.f32 %v2438_v47, %v2398_v44 }
0x10f5   :  { %v2449_v53 = vmul.f32 1.442695, %v2442_v56 }
0x10f7   :  { %3038 = vpow2.f32 %v2449_v53 }
0x10fa   :  { %v3035_v60 = vpop.eup %3034 }
0x10fb   :  { %v2452_v2 = vadd.f32 1e-06, %v3035_v60 }
0x10fd   :  { %3040 = vlog2.f32 %v2452_v2 }
0x10fe   :  { %3042 = vlog2.f32 %v2451_v0 }
0x1100   :  { %v3037_v3 = vpop.eup %3036 }
0x1101   :  { %v2453_v4 = vadd.f32 1e-06, %v3037_v3 }
0x1103   :  { %3044 = vlog2.f32 %v2453_v4 }
0x1104   :  { %v3039_v45 = vpop.eup %3038 }
0x1105   :  { %v2454_v7 = vadd.f32 1e-06, %v3039_v45 }
0x1107   :  { %3046 = vlog2.f32 %v2454_v7 }
0x110a   :  { %v3041_v36 = vpop.eup %3040 }
0x110b   :  { %v3043_v8 = vpop.eup %3042  ;;  %v2458_v6 = vmul.f32 0.6931472, %v3041_v36 }
0x110c   :  { %v2456_v10 = vmul.f32 0.6931472, %v3043_v8 }
0x110d   :  { %v2464_v15 = vsub.f32 0.0, %v2458_v6 }
0x110e   :  { %v2463_v17 = vsub.f32 0.0, %v2456_v10 }
0x1110   :  { %v3045_v39 = vpop.eup %3044  ;;  %v2467_v22 = vadd.f32 %v2464_v15, %v2463_v17 }
0x1111   :  { %v2460_v14 = vmul.f32 0.6931472, %v3045_v39 }
0x1113   :  { %v2465_v19 = vsub.f32 0.0, %v2460_v14 }
0x1114   :  { %v3047_v20 = vpop.eup %3046 }
0x1115   :  { %v2462_v23 = vmul.f32 0.6931472, %v3047_v20  ;;  %v2468_v9 = vadd.f32 %v2467_v22, %v2465_v19 }
0x1117   :  { %v2466_v24 = vsub.f32 0.0, %v2462_v23 }
0x1119   :  { %v2469_v27 = vadd.f32 %v2468_v9, %v2466_v24 }
0x111b   :  { %v2470_v12 = vrot.slane %v2469_v27, 4 }
0x111d   :  { %v2471_v61 = vadd.f32 %v2470_v12, %v2469_v27 }
0x111f   :  { %v2472_v11 = vrot.slane %v2471_v61, 2 }
0x1121   :  { %v2473_v18 = vadd.f32 %v2472_v11, %v2471_v61 }
0x1123   :  { %v2474_v29 = vrot.slane %v2473_v18, 1 }
0x1125   :  { %v2475_v28 = vadd.f32 %v2474_v29, %v2473_v18 }
0x1127   :  { %v2476_v30 = vmul.f32 0.03125, %v2475_v28 }
0x1129   :  { %2478 = vst.msk [vmem:[#allocation2] sm:$0x1] %vm2477_vm2, %v2476_v30 }
0x112a   :  { %3061 = shalt.err (!%p3058_p4)
}
0x112b   :  { %2488 = dma.vmem_to_hbm [thread:$0]  %s2486_s5, 16, %s3790_s19, [#allocation3]  }
0x112c   :  { %3070 = dma.done.wait [#allocation3], 16  }
0x112d   :  { %3071 = vsyncadd [#allocation3], 4294967280 }
0x112e   :  { %2492 = vsyncpa [#allocation3], 1 }

</bundles_post_ra>
